<compile_context>
chip_gen: v7x
topology: tpu7x:2x2x1
jax: 0.10.0
libtpu: 0.0.40
codegen_flags: <defaults>
</compile_context>

<pallas_src>
import functools
import math

import jax
import jax.numpy as jnp
import numpy as np
from jax import lax
from jax.experimental import pallas as pl
from jax.experimental.pallas import tpu as pltpu

EPS = 1e-5  # PyTorch InstanceNorm2d default eps (affine=False, biased variance)


def _resblock_kernel(x_ref, m1_ref, m2_ref, o_ref, pad_ref, *, h, w, cp, b_blk):
    """Fused (conv3x3 -> IN -> ReLU -> conv3x3 -> IN) + residual for b_blk stacked images."""
    hp = h + 2
    rows = b_blk * hp
    wcp = w * cp
    inv_hw = 1.0 / (h * w)

    # Only the per-image halo rows must be zero.  Zero just those rows every step (cheap:
    # 2*b_blk single-row stores) instead of the old full-buffer store.  Not guarded with
    # pl.program_id(0) == 0 on purpose: under dimension_semantics=("parallel",) the grid may
    # be split across TensorCores and only one core would see step 0 of its private scratch.
    zero_row = jnp.zeros((1, wcp), jnp.float32)
    for b in range(b_blk):
        pad_ref[b * hp:b * hp + 1, :] = zero_row
        pad_ref[b * hp + h + 1:b * hp + h + 2, :] = zero_row

    def conv3x3(m_ref):
        # 3 block-banded matmuls over the batch-stacked, H-halo-padded buffer.
        # NOTE: Mosaic's default multi-pass f32 MXU matmul is accurate enough for the
        # validated tolerance; pin `precision` here only if tighter agreement is needed.
        acc = jnp.dot(pad_ref[0:rows - 2, :], m_ref[0], preferred_element_type=jnp.float32)
        acc = acc + jnp.dot(pad_ref[1:rows - 1, :], m_ref[1], preferred_element_type=jnp.float32)
        acc = acc + jnp.dot(pad_ref[2:rows, :], m_ref[2], preferred_element_type=jnp.float32)
        return acc                    # (rows-2, wcp); rows [b*hp, b*hp+h) are valid for image b

    def channel_allreduce(v):
        # v: (1, wcp).  Rotation-tree all-reduce over the W lane-groups of cp channels:
        # after log2(W) roll+add rounds every lane holds its channel's total (XLU/VPU, no MXU).
        shift = cp
        while shift < wcp:
            v = v + pltpu.roll(v, shift=shift, axis=1)
            shift *= 2
        return v

    def instance_norm(y):
        # Per-image, per-channel instance norm (biased variance, one-pass E[y^2] - mean^2).
        s1 = channel_allreduce(jnp.sum(y, axis=0, keepdims=True))
        s2 = channel_allreduce(jnp.sum(y * y, axis=0, keepdims=True))
        mean = s1 * inv_hw
        var = s2 * inv_hw - mean * mean
        return (y - mean) * lax.rsqrt(var + EPS)

    # ---- stage 1: conv3x3 -> InstanceNorm -> ReLU (conv bias exactly cancelled by IN) ----
    for b in range(b_blk):
        pad_ref[b * hp + 1:b * hp + 1 + h, :] = x_ref[b]
    acc1 = conv3x3(m1_ref)
    for b in range(b_blk):
        pad_ref[b * hp + 1:b * hp + 1 + h, :] = jnp.maximum(
            instance_norm(acc1[b * hp:b * hp + h, :]), 0.0)

    # ---- stage 2: conv3x3 -> InstanceNorm, then residual add -----------------------------
    acc2 = conv3x3(m2_ref)
    for b in range(b_blk):
        o_ref[b] = x_ref[b] + instance_norm(acc2[b * hp:b * hp + h, :])


def _padded_channels(c, img_w, max_banded_bytes=8 << 20):
    """Smallest Cp >= C such that W*Cp is a multiple of 128 (lane-dense vregs, unmasked
    stores), unless that would blow up the banded weight matrices."""
    mult = 128 // math.gcd(img_w, 128)
    cp = ((c + mult - 1) // mult) * mult
    if 3 * (img_w * cp) ** 2 * 4 > max_banded_bytes:
        return c
    return cp


def _banded_conv_weights(wgt, img_w, cp):
    """(C, C, 3, 3) OIHW kernel -> (3, W*Cp, W*Cp) block-banded matrices (channels zero
    padded to Cp) so that  y[r, :] = sum_dh  xpadH[r+dh, :] @ M[dh]  reproduces a stride-1,
    pad-1 3x3 conv with the W-boundary zeros folded into the band (no lane padding)."""
    c = wgt.shape[0]
    w_pad = jnp.zeros((cp, cp, 3, 3), jnp.float32).at[:c, :c].set(wgt.astype(jnp.float32))
    wt = jnp.transpose(w_pad, (2, 3, 1, 0))                      # (dh, dw, ci, co)
    src = jnp.arange(img_w)[:, None]                             # input column
    dst = jnp.arange(img_w)[None, :]                             # output column
    dw = src - dst + 1                                           # (W, W)
    valid = ((dw >= 0) & (dw <= 2)).astype(jnp.float32)
    band = wt[:, jnp.clip(dw, 0, 2)]                             # (3, W, W, ci, co)
    band = band * valid[None, :, :, None, None]
    return jnp.transpose(band, (0, 1, 3, 2, 4)).reshape(3, img_w * cp, img_w * cp)


def prepare_resnet_block_weights(w1, w2, img_w):
    """Hoisted out of the forward path: build the banded conv matrices ONCE per model.
    Conv biases are intentionally dropped - affine=False InstanceNorm cancels them exactly."""
    cp = _padded_channels(w1.shape[0], img_w)
    return _banded_conv_weights(w1, img_w, cp), _banded_conv_weights(w2, img_w, cp)


@jax.jit
def resnet_block_fwd(x_nchw, m1, m2):
    """x_nchw: (B, C, H, W) f32; m1/m2: precomputed (3, W*Cp, W*Cp) banded conv matrices."""
    B, C, H, W = x_nchw.shape
    wcp = m1.shape[-1]
    cp = wcp // W
    # TODO(synk): roll-reduce IN stats assume power-of-two W; fall back to a narrow
    # (W*Cp, Cp) projector matmul for other widths.
    assert (W & (W - 1)) == 0 and W > 0, "roll-reduce instance norm requires power-of-two W"

    # Batch-stack images per grid step (amortize per-step overhead, raise MXU M-fill).
    # TODO(synk): for v7x prefer b_blk that keeps (B // b_blk) a multiple of 2 so the
    # "parallel" grid axis splits evenly across both TensorCores.
    b_blk = next((cand for cand in (8, 4, 2, 1)
                  if B % cand == 0 and cand * (H + 2) * wcp * 4 <= (4 << 20)), 1)

    # Lane-dense NHWC layout with channels zero-padded to Cp -> last dim W*Cp (mult. of 128).
    x = jnp.transpose(x_nchw, (0, 2, 3, 1))
    if cp != C:
        x = jnp.pad(x, ((0, 0), (0, 0), (0, 0), (0, cp - C)))
    x = x.reshape(B, H, wcp)

    # Explicit VMEM budget (v7x: 64 MiB physical per core, 32 MiB default scoped limit).
    weight_bytes = 2 * 3 * wcp * wcp * 4            # m1 + m2, single-buffered
    io_bytes = 2 * 2 * b_blk * H * wcp * 4          # x + out, double-buffered
    scratch_bytes = b_blk * (H + 2) * wcp * 4
    vmem_limit = int(min(96 << 20,
                         max(2 * (weight_bytes + io_bytes + scratch_bytes), 16 << 20)))

    kernel = functools.partial(_resblock_kernel, h=H, w=W, cp=cp, b_blk=b_blk)
    out = pl.pallas_call(
        kernel,
        out_shape=jax.ShapeDtypeStruct((B, H, wcp), jnp.float32),
        grid=(B // b_blk,),
        in_specs=[
            pl.BlockSpec((b_blk, H, wcp), lambda b: (b, 0, 0)),          # x (aliased w/ out)
            pl.BlockSpec((3, wcp, wcp), lambda b: (0, 0, 0),
                         pipeline_mode=pl.Buffered(1)),                  # conv1 band (invariant)
            pl.BlockSpec((3, wcp, wcp), lambda b: (0, 0, 0),
                         pipeline_mode=pl.Buffered(1)),                  # conv2 band (invariant)
        ],
        out_specs=pl.BlockSpec((b_blk, H, wcp), lambda b: (b, 0, 0)),
        scratch_shapes=[pltpu.VMEM((b_blk * (H + 2), wcp), jnp.float32)],  # H-halo padded buf
        input_output_aliases={0: 0},
        compiler_params=pltpu.CompilerParams(
            dimension_semantics=("parallel",),
            vmem_limit_bytes=vmem_limit),
    )(x, m1, m2)

    out = out.reshape(B, H, W, cp)[..., :C]
    return jnp.transpose(out, (0, 3, 1, 2))                             # back to NCHW


def _reference(x, w1, b1, w2, b2):
    """Pure-JAX mirror of the PyTorch module (with conv biases), f32-exact convs."""
    def conv(h, wgt, b):
        y = lax.conv_general_dilated(
            h, wgt, window_strides=(1, 1), padding=((1, 1), (1, 1)),
            dimension_numbers=("NCHW", "OIHW", "NCHW"),
            precision=lax.Precision.HIGHEST)
        return y + b[None, :, None, None]

    def inorm(h):
        mean = jnp.mean(h, axis=(2, 3), keepdims=True)
        var = jnp.mean((h - mean) ** 2, axis=(2, 3), keepdims=True)
        return (h - mean) / jnp.sqrt(var + EPS)

    h = jnp.maximum(inorm(conv(x, w1, b1)), 0.0)
    h = inorm(conv(h, w2, b2))
    return x + h


if __name__ == "__main__":
    B, C, H, W = 2, 4, 16, 16
    key = jax.random.PRNGKey(0)
    kx, k1, k2, k3, k4 = jax.random.split(key, 5)

    x = jax.random.normal(kx, (B, C, H, W), dtype=jnp.float32)
    w1 = 0.1 * jax.random.normal(k1, (C, C, 3, 3), dtype=jnp.float32)
    b1 = 0.1 * jax.random.normal(k2, (C,), dtype=jnp.float32)
    w2 = 0.1 * jax.random.normal(k3, (C, C, 3, 3), dtype=jnp.float32)
    b2 = 0.1 * jax.random.normal(k4, (C,), dtype=jnp.float32)

    # Once-per-model weight preparation (biases are exactly cancelled by affine=False IN,
    # so the kernel never sees them; the reference below still applies them).
    m1, m2 = prepare_resnet_block_weights(w1, w2, W)

    out = jax.block_until_ready(resnet_block_fwd(x, m1, m2))
    ref = jax.block_until_ready(_reference(x, w1, b1, w2, b2))

    assert out.shape == (B, C, H, W)
    # Tolerance covers the MXU's multi-pass f32 matmul path vs. the HIGHEST-precision ref.
    np.testing.assert_allclose(np.asarray(out), np.asarray(ref), rtol=1e-3, atol=1e-3)
    print("KERNEL_OK")
</pallas_src>

<mosaic_0001>
module attributes {stable_mosaic.version = 11 : i64} {
  func.func @_resblock_kernel(%arg0: i32, %arg1: memref<2x16x128xf32, #tpu.memory_space<vmem>>, %arg2: memref<3x128x128xf32, #tpu.memory_space<vmem>>, %arg3: memref<3x128x128xf32, #tpu.memory_space<vmem>>, %arg4: memref<2x16x128xf32, #tpu.memory_space<vmem>>, %arg5: memref<36x128xf32, #tpu.memory_space<vmem>>) attributes {dimension_semantics = [#tpu.dimension_semantics<parallel>], iteration_bounds = array<i64: 1>, scalar_prefetch = 0 : i64, scratch_operands = 1 : i64, tpu.core_type = #tpu.core_type<tc>, window_params = [{transform_indices = @transform_0, window_bounds = array<i64: 2, 16, 128>}, {pipeline_mode = #tpu.pipeline_mode<synchronous>, transform_indices = @transform_1, window_bounds = array<i64: 3, 128, 128>}, {pipeline_mode = #tpu.pipeline_mode<synchronous>, transform_indices = @transform_2, window_bounds = array<i64: 3, 128, 128>}, {transform_indices = @transform_3, window_bounds = array<i64: 2, 16, 128>}]} {
    %cst = arith.constant 0.000000e+00 : f32
    %0 = vector.broadcast %cst : f32 to vector<1x128xf32>
    %c0 = arith.constant 0 : index
    %c0_0 = arith.constant 0 : index
    %1 = vector.load %arg5[%c0, %c0_0] : memref<36x128xf32, #tpu.memory_space<vmem>>, vector<1x128xf32>
    tpu.vector_store %arg5[%c0, %c0_0], %0 {strides = array<i32>} : memref<36x128xf32, #tpu.memory_space<vmem>>, vector<1x128xf32>,
    %c17 = arith.constant 17 : index
    %c0_1 = arith.constant 0 : index
    %2 = vector.load %arg5[%c17, %c0_1] : memref<36x128xf32, #tpu.memory_space<vmem>>, vector<1x128xf32>
    tpu.vector_store %arg5[%c17, %c0_1], %0 {strides = array<i32>} : memref<36x128xf32, #tpu.memory_space<vmem>>, vector<1x128xf32>,
    %c18 = arith.constant 18 : index
    %c0_2 = arith.constant 0 : index
    %3 = vector.load %arg5[%c18, %c0_2] : memref<36x128xf32, #tpu.memory_space<vmem>>, vector<1x128xf32>
    tpu.vector_store %arg5[%c18, %c0_2], %0 {strides = array<i32>} : memref<36x128xf32, #tpu.memory_space<vmem>>, vector<1x128xf32>,
    %c35 = arith.constant 35 : index
    %c0_3 = arith.constant 0 : index
    %4 = vector.load %arg5[%c35, %c0_3] : memref<36x128xf32, #tpu.memory_space<vmem>>, vector<1x128xf32>
    tpu.vector_store %arg5[%c35, %c0_3], %0 {strides = array<i32>} : memref<36x128xf32, #tpu.memory_space<vmem>>, vector<1x128xf32>,
    %c0_4 = arith.constant 0 : index
    %c0_5 = arith.constant 0 : index
    %c0_6 = arith.constant 0 : index
    %5 = vector.load %arg1[%c0_4, %c0_5, %c0_6] : memref<2x16x128xf32, #tpu.memory_space<vmem>>, vector<1x16x128xf32>
    %6 = vector.shape_cast %5 : vector<1x16x128xf32> to vector<16x128xf32>
    %c1 = arith.constant 1 : index
    %c0_7 = arith.constant 0 : index
    %7 = vector.load %arg5[%c1, %c0_7] : memref<36x128xf32, #tpu.memory_space<vmem>>, vector<16x128xf32>
    tpu.vector_store %arg5[%c1, %c0_7], %6 {strides = array<i32>} : memref<36x128xf32, #tpu.memory_space<vmem>>, vector<16x128xf32>,
    %c1_8 = arith.constant 1 : index
    %c0_9 = arith.constant 0 : index
    %c0_10 = arith.constant 0 : index
    %8 = vector.load %arg1[%c1_8, %c0_9, %c0_10] : memref<2x16x128xf32, #tpu.memory_space<vmem>>, vector<1x16x128xf32>
    %9 = vector.shape_cast %8 : vector<1x16x128xf32> to vector<16x128xf32>
    %c19 = arith.constant 19 : index
    %c0_11 = arith.constant 0 : index
    %10 = vector.load %arg5[%c19, %c0_11] : memref<36x128xf32, #tpu.memory_space<vmem>>, vector<16x128xf32>
    tpu.vector_store %arg5[%c19, %c0_11], %9 {strides = array<i32>} : memref<36x128xf32, #tpu.memory_space<vmem>>, vector<16x128xf32>,
    %c0_12 = arith.constant 0 : index
    %c0_13 = arith.constant 0 : index
    %11 = vector.load %arg5[%c0_12, %c0_13] : memref<36x128xf32, #tpu.memory_space<vmem>>, vector<34x128xf32>
    %c0_14 = arith.constant 0 : index
    %c0_15 = arith.constant 0 : index
    %c0_16 = arith.constant 0 : index
    %12 = vector.load %arg2[%c0_14, %c0_15, %c0_16] : memref<3x128x128xf32, #tpu.memory_space<vmem>>, vector<1x128x128xf32>
    %13 = vector.shape_cast %12 : vector<1x128x128xf32> to vector<128x128xf32>
    %cst_17 = arith.constant dense<0.000000e+00> : vector<34x128xf32>
    %14 = tpu.matmul %11, %13, %cst_17 {dimension_numbers = #tpu.dot_dimension_numbers<[1], [0], [0], [1], [0, 0, 1, 1], [], []>} : vector<34x128xf32>, vector<128x128xf32>, vector<34x128xf32> -> vector<34x128xf32>
    %c1_18 = arith.constant 1 : index
    %c0_19 = arith.constant 0 : index
    %15 = vector.load %arg5[%c1_18, %c0_19] : memref<36x128xf32, #tpu.memory_space<vmem>>, vector<34x128xf32>
    %c1_20 = arith.constant 1 : index
    %c0_21 = arith.constant 0 : index
    %c0_22 = arith.constant 0 : index
    %16 = vector.load %arg2[%c1_20, %c0_21, %c0_22] : memref<3x128x128xf32, #tpu.memory_space<vmem>>, vector<1x128x128xf32>
    %17 = vector.shape_cast %16 : vector<1x128x128xf32> to vector<128x128xf32>
    %cst_23 = arith.constant dense<0.000000e+00> : vector<34x128xf32>
    %18 = tpu.matmul %15, %17, %cst_23 {dimension_numbers = #tpu.dot_dimension_numbers<[1], [0], [0], [1], [0, 0, 1, 1], [], []>} : vector<34x128xf32>, vector<128x128xf32>, vector<34x128xf32> -> vector<34x128xf32>
    %19 = arith.addf %14, %18 : vector<34x128xf32>
    %c2 = arith.constant 2 : index
    %c0_24 = arith.constant 0 : index
    %20 = vector.load %arg5[%c2, %c0_24] : memref<36x128xf32, #tpu.memory_space<vmem>>, vector<34x128xf32>
    %c2_25 = arith.constant 2 : index
    %c0_26 = arith.constant 0 : index
    %c0_27 = arith.constant 0 : index
    %21 = vector.load %arg2[%c2_25, %c0_26, %c0_27] : memref<3x128x128xf32, #tpu.memory_space<vmem>>, vector<1x128x128xf32>
    %22 = vector.shape_cast %21 : vector<1x128x128xf32> to vector<128x128xf32>
    %cst_28 = arith.constant dense<0.000000e+00> : vector<34x128xf32>
    %23 = tpu.matmul %20, %22, %cst_28 {dimension_numbers = #tpu.dot_dimension_numbers<[1], [0], [0], [1], [0, 0, 1, 1], [], []>} : vector<34x128xf32>, vector<128x128xf32>, vector<34x128xf32> -> vector<34x128xf32>
    %24 = arith.addf %19, %23 : vector<34x128xf32>
    %25 = vector.extract_strided_slice %24 {offsets = [0, 0], sizes = [16, 128], strides = [1, 1]} : vector<34x128xf32> to vector<16x128xf32>
    %cst_29 = arith.constant dense<0.000000e+00> : vector<128xf32>
    %26 = vector.multi_reduction <add>, %25, %cst_29 [0] : vector<16x128xf32> to vector<128xf32>
    %27 = vector.shape_cast %26 : vector<128xf32> to vector<1x128xf32>
    %c8_i32 = arith.constant 8 : i32
    %28 = tpu.dynamic_rotate %27 by %c8_i32 dim 1 : vector<1x128xf32>, i32 -> vector<1x128xf32>
    %29 = arith.addf %27, %28 : vector<1x128xf32>
    %c16_i32 = arith.constant 16 : i32
    %30 = tpu.dynamic_rotate %29 by %c16_i32 dim 1 : vector<1x128xf32>, i32 -> vector<1x128xf32>
    %31 = arith.addf %29, %30 : vector<1x128xf32>
    %c32_i32 = arith.constant 32 : i32
    %32 = tpu.dynamic_rotate %31 by %c32_i32 dim 1 : vector<1x128xf32>, i32 -> vector<1x128xf32>
    %33 = arith.addf %31, %32 : vector<1x128xf32>
    %c64_i32 = arith.constant 64 : i32
    %34 = tpu.dynamic_rotate %33 by %c64_i32 dim 1 : vector<1x128xf32>, i32 -> vector<1x128xf32>
    %35 = arith.addf %33, %34 : vector<1x128xf32>
    %36 = arith.mulf %25, %25 : vector<16x128xf32>
    %cst_30 = arith.constant dense<0.000000e+00> : vector<128xf32>
    %37 = vector.multi_reduction <add>, %36, %cst_30 [0] : vector<16x128xf32> to vector<128xf32>
    %38 = vector.shape_cast %37 : vector<128xf32> to vector<1x128xf32>
    %c8_i32_31 = arith.constant 8 : i32
    %39 = tpu.dynamic_rotate %38 by %c8_i32_31 dim 1 : vector<1x128xf32>, i32 -> vector<1x128xf32>
    %40 = arith.addf %38, %39 : vector<1x128xf32>
    %c16_i32_32 = arith.constant 16 : i32
    %41 = tpu.dynamic_rotate %40 by %c16_i32_32 dim 1 : vector<1x128xf32>, i32 -> vector<1x128xf32>
    %42 = arith.addf %40, %41 : vector<1x128xf32>
    %c32_i32_33 = arith.constant 32 : i32
    %43 = tpu.dynamic_rotate %42 by %c32_i32_33 dim 1 : vector<1x128xf32>, i32 -> vector<1x128xf32>
    %44 = arith.addf %42, %43 : vector<1x128xf32>
    %c64_i32_34 = arith.constant 64 : i32
    %45 = tpu.dynamic_rotate %44 by %c64_i32_34 dim 1 : vector<1x128xf32>, i32 -> vector<1x128xf32>
    %46 = arith.addf %44, %45 : vector<1x128xf32>
    %cst_35 = arith.constant 3.906250e-03 : f32
    %47 = vector.broadcast %cst_35 : f32 to vector<1x128xf32>
    %48 = arith.mulf %35, %47 : vector<1x128xf32>
    %cst_36 = arith.constant 3.906250e-03 : f32
    %49 = vector.broadcast %cst_36 : f32 to vector<1x128xf32>
    %50 = arith.mulf %46, %49 : vector<1x128xf32>
    %51 = arith.mulf %48, %48 : vector<1x128xf32>
    %52 = arith.subf %50, %51 : vector<1x128xf32>
    %53 = vector.broadcast %48 : vector<1x128xf32> to vector<16x128xf32>
    %54 = arith.subf %25, %53 : vector<16x128xf32>
    %cst_37 = arith.constant 9.99999974E-6 : f32
    %55 = vector.broadcast %cst_37 : f32 to vector<1x128xf32>
    %56 = arith.addf %52, %55 : vector<1x128xf32>
    %57 = math.rsqrt %56 : vector<1x128xf32>
    %58 = vector.broadcast %57 : vector<1x128xf32> to vector<16x128xf32>
    %59 = arith.mulf %54, %58 : vector<16x128xf32>
    %cst_38 = arith.constant 0.000000e+00 : f32
    %60 = vector.broadcast %cst_38 : f32 to vector<16x128xf32>
    %61 = arith.maximumf %59, %60 : vector<16x128xf32>
    %c1_39 = arith.constant 1 : index
    %c0_40 = arith.constant 0 : index
    %62 = vector.load %arg5[%c1_39, %c0_40] : memref<36x128xf32, #tpu.memory_space<vmem>>, vector<16x128xf32>
    tpu.vector_store %arg5[%c1_39, %c0_40], %61 {strides = array<i32>} : memref<36x128xf32, #tpu.memory_space<vmem>>, vector<16x128xf32>,
    %63 = vector.extract_strided_slice %24 {offsets = [18, 0], sizes = [16, 128], strides = [1, 1]} : vector<34x128xf32> to vector<16x128xf32>
    %cst_41 = arith.constant dense<0.000000e+00> : vector<128xf32>
    %64 = vector.multi_reduction <add>, %63, %cst_41 [0] : vector<16x128xf32> to vector<128xf32>
    %65 = vector.shape_cast %64 : vector<128xf32> to vector<1x128xf32>
    %c8_i32_42 = arith.constant 8 : i32
    %66 = tpu.dynamic_rotate %65 by %c8_i32_42 dim 1 : vector<1x128xf32>, i32 -> vector<1x128xf32>
    %67 = arith.addf %65, %66 : vector<1x128xf32>
    %c16_i32_43 = arith.constant 16 : i32
    %68 = tpu.dynamic_rotate %67 by %c16_i32_43 dim 1 : vector<1x128xf32>, i32 -> vector<1x128xf32>
    %69 = arith.addf %67, %68 : vector<1x128xf32>
    %c32_i32_44 = arith.constant 32 : i32
    %70 = tpu.dynamic_rotate %69 by %c32_i32_44 dim 1 : vector<1x128xf32>, i32 -> vector<1x128xf32>
    %71 = arith.addf %69, %70 : vector<1x128xf32>
    %c64_i32_45 = arith.constant 64 : i32
    %72 = tpu.dynamic_rotate %71 by %c64_i32_45 dim 1 : vector<1x128xf32>, i32 -> vector<1x128xf32>
    %73 = arith.addf %71, %72 : vector<1x128xf32>
    %74 = arith.mulf %63, %63 : vector<16x128xf32>
    %cst_46 = arith.constant dense<0.000000e+00> : vector<128xf32>
    %75 = vector.multi_reduction <add>, %74, %cst_46 [0] : vector<16x128xf32> to vector<128xf32>
    %76 = vector.shape_cast %75 : vector<128xf32> to vector<1x128xf32>
    %c8_i32_47 = arith.constant 8 : i32
    %77 = tpu.dynamic_rotate %76 by %c8_i32_47 dim 1 : vector<1x128xf32>, i32 -> vector<1x128xf32>
    %78 = arith.addf %76, %77 : vector<1x128xf32>
    %c16_i32_48 = arith.constant 16 : i32
    %79 = tpu.dynamic_rotate %78 by %c16_i32_48 dim 1 : vector<1x128xf32>, i32 -> vector<1x128xf32>
    %80 = arith.addf %78, %79 : vector<1x128xf32>
    %c32_i32_49 = arith.constant 32 : i32
    %81 = tpu.dynamic_rotate %80 by %c32_i32_49 dim 1 : vector<1x128xf32>, i32 -> vector<1x128xf32>
    %82 = arith.addf %80, %81 : vector<1x128xf32>
    %c64_i32_50 = arith.constant 64 : i32
    %83 = tpu.dynamic_rotate %82 by %c64_i32_50 dim 1 : vector<1x128xf32>, i32 -> vector<1x128xf32>
    %84 = arith.addf %82, %83 : vector<1x128xf32>
    %cst_51 = arith.constant 3.906250e-03 : f32
    %85 = vector.broadcast %cst_51 : f32 to vector<1x128xf32>
    %86 = arith.mulf %73, %85 : vector<1x128xf32>
    %cst_52 = arith.constant 3.906250e-03 : f32
    %87 = vector.broadcast %cst_52 : f32 to vector<1x128xf32>
    %88 = arith.mulf %84, %87 : vector<1x128xf32>
    %89 = arith.mulf %86, %86 : vector<1x128xf32>
    %90 = arith.subf %88, %89 : vector<1x128xf32>
    %91 = vector.broadcast %86 : vector<1x128xf32> to vector<16x128xf32>
    %92 = arith.subf %63, %91 : vector<16x128xf32>
    %cst_53 = arith.constant 9.99999974E-6 : f32
    %93 = vector.broadcast %cst_53 : f32 to vector<1x128xf32>
    %94 = arith.addf %90, %93 : vector<1x128xf32>
    %95 = math.rsqrt %94 : vector<1x128xf32>
    %96 = vector.broadcast %95 : vector<1x128xf32> to vector<16x128xf32>
    %97 = arith.mulf %92, %96 : vector<16x128xf32>
    %cst_54 = arith.constant 0.000000e+00 : f32
    %98 = vector.broadcast %cst_54 : f32 to vector<16x128xf32>
    %99 = arith.maximumf %97, %98 : vector<16x128xf32>
    %c19_55 = arith.constant 19 : index
    %c0_56 = arith.constant 0 : index
    %100 = vector.load %arg5[%c19_55, %c0_56] : memref<36x128xf32, #tpu.memory_space<vmem>>, vector<16x128xf32>
    tpu.vector_store %arg5[%c19_55, %c0_56], %99 {strides = array<i32>} : memref<36x128xf32, #tpu.memory_space<vmem>>, vector<16x128xf32>,
    %c0_57 = arith.constant 0 : index
    %c0_58 = arith.constant 0 : index
    %101 = vector.load %arg5[%c0_57, %c0_58] : memref<36x128xf32, #tpu.memory_space<vmem>>, vector<34x128xf32>
    %c0_59 = arith.constant 0 : index
    %c0_60 = arith.constant 0 : index
    %c0_61 = arith.constant 0 : index
    %102 = vector.load %arg3[%c0_59, %c0_60, %c0_61] : memref<3x128x128xf32, #tpu.memory_space<vmem>>, vector<1x128x128xf32>
    %103 = vector.shape_cast %102 : vector<1x128x128xf32> to vector<128x128xf32>
    %cst_62 = arith.constant dense<0.000000e+00> : vector<34x128xf32>
    %104 = tpu.matmul %101, %103, %cst_62 {dimension_numbers = #tpu.dot_dimension_numbers<[1], [0], [0], [1], [0, 0, 1, 1], [], []>} : vector<34x128xf32>, vector<128x128xf32>, vector<34x128xf32> -> vector<34x128xf32>
    %c1_63 = arith.constant 1 : index
    %c0_64 = arith.constant 0 : index
    %105 = vector.load %arg5[%c1_63, %c0_64] : memref<36x128xf32, #tpu.memory_space<vmem>>, vector<34x128xf32>
    %c1_65 = arith.constant 1 : index
    %c0_66 = arith.constant 0 : index
    %c0_67 = arith.constant 0 : index
    %106 = vector.load %arg3[%c1_65, %c0_66, %c0_67] : memref<3x128x128xf32, #tpu.memory_space<vmem>>, vector<1x128x128xf32>
    %107 = vector.shape_cast %106 : vector<1x128x128xf32> to vector<128x128xf32>
    %cst_68 = arith.constant dense<0.000000e+00> : vector<34x128xf32>
    %108 = tpu.matmul %105, %107, %cst_68 {dimension_numbers = #tpu.dot_dimension_numbers<[1], [0], [0], [1], [0, 0, 1, 1], [], []>} : vector<34x128xf32>, vector<128x128xf32>, vector<34x128xf32> -> vector<34x128xf32>
    %109 = arith.addf %104, %108 : vector<34x128xf32>
    %c2_69 = arith.constant 2 : index
    %c0_70 = arith.constant 0 : index
    %110 = vector.load %arg5[%c2_69, %c0_70] : memref<36x128xf32, #tpu.memory_space<vmem>>, vector<34x128xf32>
    %c2_71 = arith.constant 2 : index
    %c0_72 = arith.constant 0 : index
    %c0_73 = arith.constant 0 : index
    %111 = vector.load %arg3[%c2_71, %c0_72, %c0_73] : memref<3x128x128xf32, #tpu.memory_space<vmem>>, vector<1x128x128xf32>
    %112 = vector.shape_cast %111 : vector<1x128x128xf32> to vector<128x128xf32>
    %cst_74 = arith.constant dense<0.000000e+00> : vector<34x128xf32>
    %113 = tpu.matmul %110, %112, %cst_74 {dimension_numbers = #tpu.dot_dimension_numbers<[1], [0], [0], [1], [0, 0, 1, 1], [], []>} : vector<34x128xf32>, vector<128x128xf32>, vector<34x128xf32> -> vector<34x128xf32>
    %114 = arith.addf %109, %113 : vector<34x128xf32>
    %c0_75 = arith.constant 0 : index
    %c0_76 = arith.constant 0 : index
    %c0_77 = arith.constant 0 : index
    %115 = vector.load %arg1[%c0_75, %c0_76, %c0_77] : memref<2x16x128xf32, #tpu.memory_space<vmem>>, vector<1x16x128xf32>
    %116 = vector.shape_cast %115 : vector<1x16x128xf32> to vector<16x128xf32>
    %117 = vector.extract_strided_slice %114 {offsets = [0, 0], sizes = [16, 128], strides = [1, 1]} : vector<34x128xf32> to vector<16x128xf32>
    %cst_78 = arith.constant dense<0.000000e+00> : vector<128xf32>
    %118 = vector.multi_reduction <add>, %117, %cst_78 [0] : vector<16x128xf32> to vector<128xf32>
    %119 = vector.shape_cast %118 : vector<128xf32> to vector<1x128xf32>
    %c8_i32_79 = arith.constant 8 : i32
    %120 = tpu.dynamic_rotate %119 by %c8_i32_79 dim 1 : vector<1x128xf32>, i32 -> vector<1x128xf32>
    %121 = arith.addf %119, %120 : vector<1x128xf32>
    %c16_i32_80 = arith.constant 16 : i32
    %122 = tpu.dynamic_rotate %121 by %c16_i32_80 dim 1 : vector<1x128xf32>, i32 -> vector<1x128xf32>
    %123 = arith.addf %121, %122 : vector<1x128xf32>
    %c32_i32_81 = arith.constant 32 : i32
    %124 = tpu.dynamic_rotate %123 by %c32_i32_81 dim 1 : vector<1x128xf32>, i32 -> vector<1x128xf32>
    %125 = arith.addf %123, %124 : vector<1x128xf32>
    %c64_i32_82 = arith.constant 64 : i32
    %126 = tpu.dynamic_rotate %125 by %c64_i32_82 dim 1 : vector<1x128xf32>, i32 -> vector<1x128xf32>
    %127 = arith.addf %125, %126 : vector<1x128xf32>
    %128 = arith.mulf %117, %117 : vector<16x128xf32>
    %cst_83 = arith.constant dense<0.000000e+00> : vector<128xf32>
    %129 = vector.multi_reduction <add>, %128, %cst_83 [0] : vector<16x128xf32> to vector<128xf32>
    %130 = vector.shape_cast %129 : vector<128xf32> to vector<1x128xf32>
    %c8_i32_84 = arith.constant 8 : i32
    %131 = tpu.dynamic_rotate %130 by %c8_i32_84 dim 1 : vector<1x128xf32>, i32 -> vector<1x128xf32>
    %132 = arith.addf %130, %131 : vector<1x128xf32>
    %c16_i32_85 = arith.constant 16 : i32
    %133 = tpu.dynamic_rotate %132 by %c16_i32_85 dim 1 : vector<1x128xf32>, i32 -> vector<1x128xf32>
    %134 = arith.addf %132, %133 : vector<1x128xf32>
    %c32_i32_86 = arith.constant 32 : i32
    %135 = tpu.dynamic_rotate %134 by %c32_i32_86 dim 1 : vector<1x128xf32>, i32 -> vector<1x128xf32>
    %136 = arith.addf %134, %135 : vector<1x128xf32>
    %c64_i32_87 = arith.constant 64 : i32
    %137 = tpu.dynamic_rotate %136 by %c64_i32_87 dim 1 : vector<1x128xf32>, i32 -> vector<1x128xf32>
    %138 = arith.addf %136, %137 : vector<1x128xf32>
    %cst_88 = arith.constant 3.906250e-03 : f32
    %139 = vector.broadcast %cst_88 : f32 to vector<1x128xf32>
    %140 = arith.mulf %127, %139 : vector<1x128xf32>
    %cst_89 = arith.constant 3.906250e-03 : f32
    %141 = vector.broadcast %cst_89 : f32 to vector<1x128xf32>
    %142 = arith.mulf %138, %141 : vector<1x128xf32>
    %143 = arith.mulf %140, %140 : vector<1x128xf32>
    %144 = arith.subf %142, %143 : vector<1x128xf32>
    %145 = vector.broadcast %140 : vector<1x128xf32> to vector<16x128xf32>
    %146 = arith.subf %117, %145 : vector<16x128xf32>
    %cst_90 = arith.constant 9.99999974E-6 : f32
    %147 = vector.broadcast %cst_90 : f32 to vector<1x128xf32>
    %148 = arith.addf %144, %147 : vector<1x128xf32>
    %149 = math.rsqrt %148 : vector<1x128xf32>
    %150 = vector.broadcast %149 : vector<1x128xf32> to vector<16x128xf32>
    %151 = arith.mulf %146, %150 : vector<16x128xf32>
    %152 = arith.addf %116, %151 : vector<16x128xf32>
    %c0_91 = arith.constant 0 : index
    %c0_92 = arith.constant 0 : index
    %c0_93 = arith.constant 0 : index
    %153 = vector.load %arg4[%c0_91, %c0_92, %c0_93] : memref<2x16x128xf32, #tpu.memory_space<vmem>>, vector<1x16x128xf32>
    %154 = vector.shape_cast %153 : vector<1x16x128xf32> to vector<16x128xf32>
    %155 = vector.shape_cast %152 : vector<16x128xf32> to vector<1x16x128xf32>
    tpu.vector_store %arg4[%c0_91, %c0_92, %c0_93], %155 {strides = array<i32>} : memref<2x16x128xf32, #tpu.memory_space<vmem>>, vector<1x16x128xf32>,
    %c1_94 = arith.constant 1 : index
    %c0_95 = arith.constant 0 : index
    %c0_96 = arith.constant 0 : index
    %156 = vector.load %arg1[%c1_94, %c0_95, %c0_96] : memref<2x16x128xf32, #tpu.memory_space<vmem>>, vector<1x16x128xf32>
    %157 = vector.shape_cast %156 : vector<1x16x128xf32> to vector<16x128xf32>
    %158 = vector.extract_strided_slice %114 {offsets = [18, 0], sizes = [16, 128], strides = [1, 1]} : vector<34x128xf32> to vector<16x128xf32>
    %cst_97 = arith.constant dense<0.000000e+00> : vector<128xf32>
    %159 = vector.multi_reduction <add>, %158, %cst_97 [0] : vector<16x128xf32> to vector<128xf32>
    %160 = vector.shape_cast %159 : vector<128xf32> to vector<1x128xf32>
    %c8_i32_98 = arith.constant 8 : i32
    %161 = tpu.dynamic_rotate %160 by %c8_i32_98 dim 1 : vector<1x128xf32>, i32 -> vector<1x128xf32>
    %162 = arith.addf %160, %161 : vector<1x128xf32>
    %c16_i32_99 = arith.constant 16 : i32
    %163 = tpu.dynamic_rotate %162 by %c16_i32_99 dim 1 : vector<1x128xf32>, i32 -> vector<1x128xf32>
    %164 = arith.addf %162, %163 : vector<1x128xf32>
    %c32_i32_100 = arith.constant 32 : i32
    %165 = tpu.dynamic_rotate %164 by %c32_i32_100 dim 1 : vector<1x128xf32>, i32 -> vector<1x128xf32>
    %166 = arith.addf %164, %165 : vector<1x128xf32>
    %c64_i32_101 = arith.constant 64 : i32
    %167 = tpu.dynamic_rotate %166 by %c64_i32_101 dim 1 : vector<1x128xf32>, i32 -> vector<1x128xf32>
    %168 = arith.addf %166, %167 : vector<1x128xf32>
    %169 = arith.mulf %158, %158 : vector<16x128xf32>
    %cst_102 = arith.constant dense<0.000000e+00> : vector<128xf32>
    %170 = vector.multi_reduction <add>, %169, %cst_102 [0] : vector<16x128xf32> to vector<128xf32>
    %171 = vector.shape_cast %170 : vector<128xf32> to vector<1x128xf32>
    %c8_i32_103 = arith.constant 8 : i32
    %172 = tpu.dynamic_rotate %171 by %c8_i32_103 dim 1 : vector<1x128xf32>, i32 -> vector<1x128xf32>
    %173 = arith.addf %171, %172 : vector<1x128xf32>
    %c16_i32_104 = arith.constant 16 : i32
    %174 = tpu.dynamic_rotate %173 by %c16_i32_104 dim 1 : vector<1x128xf32>, i32 -> vector<1x128xf32>
    %175 = arith.addf %173, %174 : vector<1x128xf32>
    %c32_i32_105 = arith.constant 32 : i32
    %176 = tpu.dynamic_rotate %175 by %c32_i32_105 dim 1 : vector<1x128xf32>, i32 -> vector<1x128xf32>
    %177 = arith.addf %175, %176 : vector<1x128xf32>
    %c64_i32_106 = arith.constant 64 : i32
    %178 = tpu.dynamic_rotate %177 by %c64_i32_106 dim 1 : vector<1x128xf32>, i32 -> vector<1x128xf32>
    %179 = arith.addf %177, %178 : vector<1x128xf32>
    %cst_107 = arith.constant 3.906250e-03 : f32
    %180 = vector.broadcast %cst_107 : f32 to vector<1x128xf32>
    %181 = arith.mulf %168, %180 : vector<1x128xf32>
    %cst_108 = arith.constant 3.906250e-03 : f32
    %182 = vector.broadcast %cst_108 : f32 to vector<1x128xf32>
    %183 = arith.mulf %179, %182 : vector<1x128xf32>
    %184 = arith.mulf %181, %181 : vector<1x128xf32>
    %185 = arith.subf %183, %184 : vector<1x128xf32>
    %186 = vector.broadcast %181 : vector<1x128xf32> to vector<16x128xf32>
    %187 = arith.subf %158, %186 : vector<16x128xf32>
    %cst_109 = arith.constant 9.99999974E-6 : f32
    %188 = vector.broadcast %cst_109 : f32 to vector<1x128xf32>
    %189 = arith.addf %185, %188 : vector<1x128xf32>
    %190 = math.rsqrt %189 : vector<1x128xf32>
    %191 = vector.broadcast %190 : vector<1x128xf32> to vector<16x128xf32>
    %192 = arith.mulf %187, %191 : vector<16x128xf32>
    %193 = arith.addf %157, %192 : vector<16x128xf32>
    %c1_110 = arith.constant 1 : index
    %c0_111 = arith.constant 0 : index
    %c0_112 = arith.constant 0 : index
    %194 = vector.load %arg4[%c1_110, %c0_111, %c0_112] : memref<2x16x128xf32, #tpu.memory_space<vmem>>, vector<1x16x128xf32>
    %195 = vector.shape_cast %194 : vector<1x16x128xf32> to vector<16x128xf32>
    %196 = vector.shape_cast %193 : vector<16x128xf32> to vector<1x16x128xf32>
    tpu.vector_store %arg4[%c1_110, %c0_111, %c0_112], %196 {strides = array<i32>} : memref<2x16x128xf32, #tpu.memory_space<vmem>>, vector<1x16x128xf32>,
    return
  }
  func.func @transform_0(%arg0: i32) -> (i32, i32, i32) {
    %c0_i32 = arith.constant 0 : i32
    %c0_i32_0 = arith.constant 0 : i32
    %c0_i32_1 = arith.constant 0 : i32
    return %arg0, %c0_i32, %c0_i32_0 : i32, i32, i32
  }
  func.func @transform_1(%arg0: i32) -> (i32, i32, i32) {
    %c0_i32 = arith.constant 0 : i32
    %c0_i32_0 = arith.constant 0 : i32
    %c0_i32_1 = arith.constant 0 : i32
    %c0_i32_2 = arith.constant 0 : i32
    return %c0_i32, %c0_i32_0, %c0_i32_1 : i32, i32, i32
  }
  func.func @transform_2(%arg0: i32) -> (i32, i32, i32) {
    %c0_i32 = arith.constant 0 : i32
    %c0_i32_0 = arith.constant 0 : i32
    %c0_i32_1 = arith.constant 0 : i32
    %c0_i32_2 = arith.constant 0 : i32
    return %c0_i32, %c0_i32_0, %c0_i32_1 : i32, i32, i32
  }
  func.func @transform_3(%arg0: i32) -> (i32, i32, i32) {
    %c0_i32 = arith.constant 0 : i32
    %c0_i32_0 = arith.constant 0 : i32
    %c0_i32_1 = arith.constant 0 : i32
    return %arg0, %c0_i32, %c0_i32_0 : i32, i32, i32
  }
}

</mosaic_0001>

<bundles_post_ra>
// kernel: resnet_block_fwd.1
= control target key start
LH: loop header
LB: loop body
LE: loop exit
PB: predicated region body
PF: predicated region fallthrough
CT: control target
= control target key end

     0   :  { %v1700_v0 = vmov 0.0|0.0   ;;  %vm1701_vm0 = vmmov 0   ;;  %v1702_v4 = vmov 0.0   ;;  %vm432_vm1 = vcmask 1045504   ;;  %s1704_s8 = smov 16   ;;  %s1705_s9 = smov 32   ;;  %s2277_s1 = inlined_call_operand.vmem [shape: f32[3,128,128], index: 1, kind: input, shape index: {}]   ;;  %s2278_s0 = inlined_call_operand.vmem [shape: f32[2,16,128], index: 0, kind: input, shape index: {}, may-alias: {0,3}]   ;;  %s2279_s2 = inlined_call_operand.vmem [shape: f32[3,128,128], index: 2, kind: input, shape index: {}]   ;;  %s2280_s3 = inlined_call_operand.vmem [shape: f32[2,16,128], index: 3, kind: output, shape index: {}, may-alias: {0,3}]  }
   0x1   :  { %1501 = vmatprep.subr.bf16.mxu0 %v1700_v0  ;;  %v1025_v1 = vld [vmem:[%s2277_s1 + $0x80] sm:$0xff]  ;;  %v1026_v2 = vld [vmem:[%s2277_s1 + $0x88] sm:$0xff]  ;;  %v1027_v3 = vld [vmem:[%s2277_s1 + $0x90] sm:$0xff]  ;;  %1251 = vmatprep.mubr.msk.f32.mxu0 %vm1701_vm0, %v1702_v4  ;;  %14 = vst [vmem:[#allocation2] sm:$0x1] %v1702_v4  ;;  %s1706_s30 = smov 64  }
   0x2   :  { %15 = vst [vmem:[#allocation2 + $0x11] sm:$0x1] %v1702_v4  ;;  %16 = vst [vmem:[#allocation2 + $0x12] sm:$0x1] %v1702_v4  ;;  %v1502_v5 = vpack.c.bf16 %v1026_v2, %v1025_v1  ;;  %v1028_v6 = vld [vmem:[%s2277_s1 + $0x98] sm:$0xff]  ;;  %1573 = vmatprep.subr.bf16.mxu1 %v1700_v0  ;;  %1392 = vmatprep.mubr.msk.f32.mxu1 %vm1701_vm0, %v1702_v4  ;;  %v1029_v8 = vld [vmem:[%s2277_s1 + $0xa0] sm:$0xff] }
   0x3   :  { %17 = vst [vmem:[#allocation2 + $0x23] sm:$0x1] %v1702_v4  ;;  %v1505_v7 = vpack.c.bf16 %v1028_v6, %v1027_v3  ;;  %v1030_v9 = vld [vmem:[%s2277_s1 + $0xa8] sm:$0xff]  ;;  %v18_v10 = vld [vmem:[%s2278_s0] sm:$0xff]  ;;  %v1031_v12 = vld [vmem:[%s2277_s1 + $0xb0] sm:$0xff] }
   0x4   :  { %1503 = vmatpush3.bf16.msra.mxu0 %v1502_v5  ;;  %20 = vst [vmem:[#allocation2 + $0x1] sm:$0xff] %v18_v10  ;;  %v1508_v11 = vpack.c.bf16 %v1030_v9, %v1029_v8  ;;  %v1032_v13 = vld [vmem:[%s2277_s1 + $0xb8] sm:$0xff]  ;;  %v19_v14 = vld [vmem:[%s2278_s0 + $0x8] sm:$0xff]  ;;  %v1772_v15 = vld [vmem:[%s2278_s0 + $0x10] sm:$0xff] }
   0x5   :  { %1504 = vmatprep.subr.bf16.mxu0 %v1700_v0  ;;  %21 = vst [vmem:[#allocation2 + $0x9] sm:$0xff] %v19_v14  ;;  %25 = vst [vmem:[#allocation2 + $0x13] sm:$0xff] %v1772_v15  ;;  %v1778_v16 = vld [vmem:[%s2278_s0 + $0x18] sm:$0xff]  ;;  %v1511_v17 = vpack.c.bf16 %v1032_v13, %v1031_v12  ;;  %v1033_v18 = vld [vmem:[%s2277_s1 + $0xc0] sm:$0xff] }
   0x6   :  { %26 = vst [vmem:[#allocation2 + $0x1b] sm:$0xff] %v1778_v16  ;;  %v1034_v19 = vld [vmem:[%s2277_s1 + $0xc8] sm:$0xff]  ;;  %v1035_v21 = vld [vmem:[%s2277_s1 + $0xd0] sm:$0xff]  ;;  %v1036_v22 = vld [vmem:[%s2277_s1 + $0xd8] sm:$0xff] }
   0x7   :  { %v1514_v20 = vpack.c.bf16 %v1034_v19, %v1033_v18  ;;  %v1517_v23 = vpack.c.bf16 %v1036_v22, %v1035_v21  ;;  %v1037_v24 = vld [vmem:[%s2277_s1 + $0xe0] sm:$0xff]  ;;  %v1038_v25 = vld [vmem:[%s2277_s1 + $0xe8] sm:$0xff]  ;;  %v1039_v27 = vld [vmem:[%s2277_s1 + $0xf0] sm:$0xff] }
   0x8   :  { %1506 = vmatpush3.bf16.msra.mxu0 %v1505_v7  ;;  %v1520_v26 = vpack.c.bf16 %v1038_v25, %v1037_v24  ;;  %v1040_v28 = vld [vmem:[%s2277_s1 + $0xf8] sm:$0xff]  ;;  %v32_v30 = vld [vmem:[%s2277_s1] sm:$0xff]  ;;  %v33_v31 = vld [vmem:[%s2277_s1 + $0x8] sm:$0xff] }
   0x9   :  { %1507 = vmatprep.subr.bf16.mxu0 %v1700_v0  ;;  %v1523_v29 = vpack.c.bf16 %v1040_v28, %v1039_v27  ;;  %v1526_v32 = vpack.c.bf16 %v33_v31, %v32_v30  ;;  %v34_v33 = vld [vmem:[%s2277_s1 + $0x10] sm:$0xff]  ;;  %v35_v34 = vld [vmem:[%s2277_s1 + $0x18] sm:$0xff]  ;;  %v36_v36 = vld [vmem:[%s2277_s1 + $0x20] sm:$0xff] }
   0xa   :  { %v1529_v35 = vpack.c.bf16 %v35_v34, %v34_v33  ;;  %v37_v37 = vld [vmem:[%s2277_s1 + $0x28] sm:$0xff]  ;;  %v38_v40 = vld [vmem:[%s2277_s1 + $0x30] sm:$0xff]  ;;  %v39_v41 = vld [vmem:[%s2277_s1 + $0x38] sm:$0xff] }
   0xb   :  { %v1532_v38 = vpack.c.bf16 %v37_v37, %v36_v36  ;;  %v1535_v42 = vpack.c.bf16 %v39_v41, %v38_v40  ;;  %v40_v44 = vld [vmem:[%s2277_s1 + $0x40] sm:$0xff]  ;;  %v41_v45 = vld [vmem:[%s2277_s1 + $0x48] sm:$0xff]  ;;  %v42_v48 = vld [vmem:[%s2277_s1 + $0x50] sm:$0xff] }
   0xc   :  { %1509 = vmatpush3.bf16.msra.mxu0 %v1508_v11  ;;  %v50_v39 = vld [vmem:[#allocation2 + $0x11] sm:$0xff]  ;;  %v1538_v46 = vpack.c.bf16 %v41_v45, %v40_v44  ;;  %v44_v51 = vld [vmem:[%s2277_s1 + $0x60] sm:$0xff]  ;;  %v45_v52 = vld [vmem:[%s2277_s1 + $0x68] sm:$0xff] }
   0xd   :  { %1510 = vmatprep.subr.bf16.mxu0 %v1700_v0  ;;  %v51_v43 = vld [vmem:[#allocation2 + $0x19] sm:$0xff]  ;;  %v52_v47 = vld [vmem:[#allocation2 + $0x21] sm:$0x3]  ;;  %v1544_v53 = vpack.c.bf16 %v45_v52, %v44_v51  ;;  %v46_v54 = vld [vmem:[%s2277_s1 + $0x70] sm:$0xff] }
   0xe   :  { %v43_v49 = vld [vmem:[%s2277_s1 + $0x58] sm:$0xff]  ;;  %v1041_v57 = vld [vmem:[%s2277_s1 + $0x100] sm:$0xff]  ;;  %v1042_v58 = vld [vmem:[%s2277_s1 + $0x108] sm:$0xff] }
   0xf   :  { %v1541_v50 = vpack.c.bf16 %v43_v49, %v42_v48  ;;  %v47_v55 = vld [vmem:[%s2277_s1 + $0x78] sm:$0xff]  ;;  %v27_v59 = vld [vmem:[#allocation2] sm:$0xff]  ;;  %v1550_v60 = vpack.c.bf16 %v1042_v58, %v1041_v57  ;;  %v1043_v61 = vld [vmem:[%s2277_s1 + $0x110] sm:$0xff] }
  0x10   :  { %1512 = vmatpush3.bf16.msra.mxu0 %v1511_v17  ;;  %v1547_v56 = vpack.c.bf16 %v47_v55, %v46_v54  ;;  %v1044_v62 = vld [vmem:[%s2277_s1 + $0x118] sm:$0xff]  ;;  %v28_v1 = vld [vmem:[#allocation2 + $0x8] sm:$0xff]  ;;  %v1045_v2 = vld [vmem:[%s2277_s1 + $0x120] sm:$0xff] }
  0x11   :  { %1513 = vmatprep.subr.bf16.mxu0 %v1700_v0  ;;  %v1553_v63 = vpack.c.bf16 %v1044_v62, %v1043_v61  ;;  %v1046_v3 = vld [vmem:[%s2277_s1 + $0x128] sm:$0xff]  ;;  %v29_v6 = vld [vmem:[#allocation2 + $0x10] sm:$0xff]  ;;  %v1048_v8 = vld [vmem:[%s2277_s1 + $0x138] sm:$0xff] }
  0x12   :  { %v1556_v5 = vpack.c.bf16 %v1046_v3, %v1045_v2  ;;  %v1047_v7 = vld [vmem:[%s2277_s1 + $0x130] sm:$0xff]  ;;  %v1049_v11 = vld [vmem:[%s2277_s1 + $0x140] sm:$0xff]  ;;  %v1050_v12 = vld [vmem:[%s2277_s1 + $0x148] sm:$0xff] }
  0x13   :  { %v1559_v9 = vpack.c.bf16 %v1048_v8, %v1047_v7  ;;  %v1562_v13 = vpack.c.bf16 %v1050_v12, %v1049_v11  ;;  %v1051_v17 = vld [vmem:[%s2277_s1 + $0x150] sm:$0xff]  ;;  %v1052_v18 = vld [vmem:[%s2277_s1 + $0x158] sm:$0xff]  ;;  %v1054_v21 = vld [vmem:[%s2277_s1 + $0x168] sm:$0xff] }
  0x14   :  { %1515 = vmatpush3.bf16.msra.mxu0 %v1514_v20  ;;  %v1565_v19 = vpack.c.bf16 %v1052_v18, %v1051_v17  ;;  %v1053_v20 = vld [vmem:[%s2277_s1 + $0x160] sm:$0xff]  ;;  %v1056_v24 = vld [vmem:[%s2277_s1 + $0x178] sm:$0xff]  ;;  %v251_v27 = vld [vmem:[#allocation2 + $0xa] sm:$0xff] }
  0x15   :  { %1516 = vmatprep.subr.bf16.mxu0 %v1700_v0  ;;  %v1568_v22 = vpack.c.bf16 %v1054_v21, %v1053_v20  ;;  %v252_v28 = vld [vmem:[#allocation2 + $0x12] sm:$0xff]  ;;  %v254_v30 = vld [vmem:[#allocation2 + $0x22] sm:$0x3] }
  0x18   :  { %1518 = vmatpush3.bf16.msra.mxu0 %v1517_v23  ;;  %v1055_v23 = vld [vmem:[%s2277_s1 + $0x170] sm:$0xff]  ;;  %s1703_s1 = smov 8  }
  0x19   :  { %1519 = vmatprep.subr.bf16.mxu0 %v1700_v0  ;;  %v1571_v25 = vpack.c.bf16 %v1056_v24, %v1055_v23 }
  0x1c   :  { %1521 = vmatpush3.bf16.msra.mxu0 %v1520_v26  ;;  %v250_v26 = vld [vmem:[#allocation2 + $0x2] sm:$0xff] }
  0x1d   :  { %1522 = vmatprep.subr.bf16.mxu0 %v1700_v0 }
  0x20   :  { %1524 = vmatpush3.bf16.msra.mxu0 %v1523_v29  ;;  %v253_v29 = vld [vmem:[#allocation2 + $0x1a] sm:$0xff] }
  0x21   :  { %1525 = vmatprep.subr.bf16.mxu0 %v1700_v0 }
  0x23   :  { %1252 = vmatmul.mubr.f32.vlgmr.msra.gmra.mrb[0].mxu0 %v18_v10  ;;  %v30_v10 = vld [vmem:[#allocation2 + $0x18] sm:$0xff] }
  0x24   :  { %1527 = vmatpush3.bf16.msra.mxu0 %v1526_v32  ;;  %1254 = vmatprep.mubr.msk.f32.mxu0 %vm1701_vm0, %v1702_v4 }
  0x25   :  { %1528 = vmatprep.subr.bf16.mxu0 %v1700_v0 }
  0x27   :  { %1255 = vmatmul.mubr.f32.gmra.mrb[2].mxu0 %v19_v14  ;;  %v31_v14 = vld [vmem:[#allocation2 + $0x20] sm:$0x3] }
  0x28   :  { %1530 = vmatpush3.bf16.msra.mxu0 %v1529_v35  ;;  %1257 = vmatprep.mubr.msk.f32.mxu0 %vm1701_vm0, %v1702_v4 }
  0x29   :  { %1531 = vmatprep.subr.bf16.mxu0 %v1700_v0 }
  0x2b   :  { %1258 = vmatmul.mubr.f32.gmra.mrb[4].mxu0 %v50_v39 }
  0x2c   :  { %1533 = vmatpush3.bf16.msra.mxu0 %v1532_v38  ;;  %1260 = vmatprep.mubr.msk.f32.mxu0 %vm1701_vm0, %v1702_v4 }
  0x2d   :  { %1534 = vmatprep.subr.bf16.mxu0 %v1700_v0 }
  0x2f   :  { %1261 = vmatmul.mubr.f32.gmra.mrb[6].mxu0 %v51_v43 }
  0x30   :  { %1536 = vmatpush3.bf16.msra.mxu0 %v1535_v42  ;;  %1263 = vmatprep.mubr.msk.f32.mxu0 %vm1701_vm0, %v1702_v4 }
  0x31   :  { %1537 = vmatprep.subr.bf16.mxu0 %v1700_v0 }
  0x33   :  { %1264 = vmatmul.mubr.f32.gmra.mrb[8].mxu0 %v52_v47 }
  0x34   :  { %1539 = vmatpush3.bf16.msra.mxu0 %v1538_v46  ;;  %1298 = vmatprep.mubr.msk.f32.mxu0 %vm1701_vm0, %v1702_v4 }
  0x35   :  { %1540 = vmatprep.subr.bf16.mxu0 %v1700_v0 }
  0x38   :  { %1542 = vmatpush3.bf16.msra.mxu0 %v1541_v50 }
  0x39   :  { %1543 = vmatprep.subr.bf16.mxu0 %v1700_v0 }
  0x3c   :  { %1545 = vmatpush3.bf16.msra.mxu0 %v1544_v53 }
  0x3d   :  { %1546 = vmatprep.subr.bf16.mxu0 %v1700_v0 }
  0x40   :  { %1548 = vmatpush3.bf16.msra.mxu0 %v1547_v56 }
  0x41   :  { %1549 = vmatprep.subr.bf16.mxu0 %v1700_v0 }
  0x43   :  { %1299 = vmatmul.mubr.f32.vlgmr.msra.gmra.mrb[0].mxu0 %v27_v59 }
  0x44   :  { %1551 = vmatpush3.bf16.msra.mxu0 %v1550_v60  ;;  %1301 = vmatprep.mubr.msk.f32.mxu0 %vm1701_vm0, %v1702_v4 }
  0x45   :  { %1552 = vmatprep.subr.bf16.mxu0 %v1700_v0 }
  0x47   :  { %1302 = vmatmul.mubr.f32.gmra.mrb[2].mxu0 %v28_v1 }
  0x48   :  { %1554 = vmatpush3.bf16.msra.mxu0 %v1553_v63  ;;  %1304 = vmatprep.mubr.msk.f32.mxu0 %vm1701_vm0, %v1702_v4 }
  0x49   :  { %1555 = vmatprep.subr.bf16.mxu0 %v1700_v0 }
  0x4b   :  { %1305 = vmatmul.mubr.f32.gmra.mrb[4].mxu0 %v29_v6 }
  0x4c   :  { %1557 = vmatpush3.bf16.msra.mxu0 %v1556_v5  ;;  %1307 = vmatprep.mubr.msk.f32.mxu0 %vm1701_vm0, %v1702_v4 }
  0x4d   :  { %1558 = vmatprep.subr.bf16.mxu0 %v1700_v0 }
  0x4f   :  { %1308 = vmatmul.mubr.f32.gmra.mrb[6].mxu0 %v30_v10 }
  0x50   :  { %1560 = vmatpush3.bf16.msra.mxu0 %v1559_v9  ;;  %1310 = vmatprep.mubr.msk.f32.mxu0 %vm1701_vm0, %v1702_v4 }
  0x51   :  { %1561 = vmatprep.subr.bf16.mxu0 %v1700_v0 }
  0x53   :  { %1311 = vmatmul.mubr.f32.gmra.mrb[8].mxu0 %v31_v14 }
  0x54   :  { %1563 = vmatpush3.bf16.msra.mxu0 %v1562_v13  ;;  %1345 = vmatprep.mubr.msk.f32.mxu0 %vm1701_vm0, %v1702_v4 }
  0x55   :  { %1564 = vmatprep.subr.bf16.mxu0 %v1700_v0 }
  0x58   :  { %1566 = vmatpush3.bf16.msra.mxu0 %v1565_v19 }
  0x59   :  { %1567 = vmatprep.subr.bf16.mxu0 %v1700_v0 }
  0x5c   :  { %1569 = vmatpush3.bf16.msra.mxu0 %v1568_v22 }
  0x5d   :  { %1570 = vmatprep.subr.bf16.mxu0 %v1700_v0 }
  0x60   :  { %1572 = vmatpush3.bf16.msra.mxu0 %v1571_v25 }
  0x63   :  { %1346 = vmatmul.mubr.f32.vlgmr.msra.gmra.mrb[0].mxu0 %v250_v26 }
  0x64   :  { %1348 = vmatprep.mubr.msk.f32.mxu0 %vm1701_vm0, %v1702_v4 }
  0x67   :  { %1349 = vmatmul.mubr.f32.gmra.mrb[2].mxu0 %v251_v27 }
  0x68   :  { %1351 = vmatprep.mubr.msk.f32.mxu0 %vm1701_vm0, %v1702_v4 }
  0x6b   :  { %1352 = vmatmul.mubr.f32.gmra.mrb[4].mxu0 %v252_v28 }
  0x6c   :  { %1354 = vmatprep.mubr.msk.f32.mxu0 %vm1701_vm0, %v1702_v4 }
  0x6f   :  { %1355 = vmatmul.mubr.f32.gmra.mrb[6].mxu0 %v253_v29 }
  0x70   :  { %1357 = vmatprep.mubr.msk.f32.mxu0 %vm1701_vm0, %v1702_v4 }
  0x73   :  { %1358 = vmatmul.mubr.f32.gmra.mrb[8].mxu0 %v254_v30 }
 0x136   :  { %v1950_v31 = vpop.f32.mrb[0].mxu0 }
 0x137   :  { %v1347_v32 = vpop.f32.mrb[1].mxu0  ;;  %v386_v34 = vmul.f32 %v1950_v31, %v1950_v31 }
 0x13a   :  { %v1952_v33 = vpop.f32.mrb[2].mxu0 }
 0x13b   :  { %v367_v35 = vadd.f32 %v1952_v33, %v1950_v31  ;;  %v387_v36 = vmul.f32 %v1952_v33, %v1952_v33  ;;  %v1350_v37 = vpop.f32.mrb[3].mxu0 }
 0x13d   :  { %v368_v38 = vrot.slane %v367_v35, 4  ;;  %v388_v39 = vadd.f32 %v387_v36, %v386_v34 }
 0x13e   :  { %v1960_v40 = vpop.f32.mrb[4].mxu0 }
 0x13f   :  { %v389_v41 = vrot.slane %v388_v39, 4  ;;  %v1353_v42 = vpop.f32.mrb[5].mxu0  ;;  %v369_v43 = vadd.f32 %v368_v38, %v367_v35  ;;  %v459_v44 = vmul.f32 %v1960_v40, %v1960_v40  ;;  %v433_v47 = vrot.slane %v1960_v40, 2 }
 0x141   :  { %v390_v45 = vadd.f32 %v389_v41, %v388_v39  ;;  %v370_v46 = vrot.slane %v369_v43, 2  ;;  %v465_v54 = vrot.slane %v459_v44, 2  ;;  %v1058_v44 = vld [vmem:[%s2279_s2 + $0x88] sm:$0xff] }
 0x142   :  { %v1965_v48 = vpop.f32.mrb[6].mxu0 }
 0x143   :  { %v434_v49 = vrot.slane %v1965_v48, 2  ;;  %v460_v50 = vmul.f32 %v1965_v48, %v1965_v48  ;;  %v1356_v51 = vpop.f32.mrb[7].mxu0  ;;  %v371_v52 = vadd.f32 %v370_v46, %v369_v43  ;;  %v391_v53 = vrot.slane %v390_v45, 2  ;;  %v1057_v43 = vld [vmem:[%s2279_s2 + $0x80] sm:$0xff]  ;;  %v1059_v46 = vld [vmem:[%s2279_s2 + $0x90] sm:$0xff] }
 0x144   :  { %v1062_v51 = vld [vmem:[%s2279_s2 + $0xa8] sm:$0xff] }
 0x145   :  { %v435_v55 = vsel %vm432_vm1, %v433_v47, %v434_v49  ;;  %v466_v56 = vrot.slane %v460_v50, 2  ;;  %v372_v57 = vrot.slane %v371_v52, 1  ;;  %v392_v58 = vadd.f32 %v391_v53, %v390_v45  ;;  %v1060_v47 = vld [vmem:[%s2279_s2 + $0x98] sm:$0xff]  ;;  %v1061_v50 = vld [vmem:[%s2279_s2 + $0xa0] sm:$0xff]  ;;  %v1063_v53 = vld [vmem:[%s2279_s2 + $0xb0] sm:$0xff] }
 0x146   :  { %v1971_v59 = vpop.f32.mrb[8].mxu0  ;;  %v1574_v45 = vpack.c.bf16 %v1058_v44, %v1057_v43 }
 0x147   :  { %v467_v60 = vsel %vm432_vm1, %v465_v54, %v466_v56  ;;  %v436_v61 = vrot.slane %v1971_v59, 2  ;;  %v461_v62 = vmul.f32 %v1971_v59, %v1971_v59  ;;  %v1359_v63 = vpop.f32.mrb[9].mxu0  ;;  %v373_v1 = vadd.f32 %v372_v57, %v371_v52  ;;  %v1064_v54 = vld [vmem:[%s2279_s2 + $0xb8] sm:$0xff] }
 0x148   :  { %v393_v2 = vrot.slane %v392_v58, 1  ;;  %1575 = vmatpush3.bf16.msra.mxu1 %v1574_v45  ;;  %v1580_v52 = vpack.c.bf16 %v1062_v51, %v1061_v50  ;;  %v522_v45 = vld [vmem:[%s2279_s2] sm:$0xff] }
 0x149   :  { %v437_v3 = vsel %vm432_vm1, %v434_v49, %v436_v61  ;;  %v468_v5 = vrot.slane %v461_v62, 2  ;;  %374 = vrot.lane.b32.xlu0 %v373_v1, %s1703_s1  ;;  %1576 = vmatprep.subr.bf16.mxu1 %v1700_v0  ;;  %v1577_v49 = vpack.c.bf16 %v1060_v47, %v1059_v46  ;;  %v523_v46 = vld [vmem:[%s2279_s2 + $0x8] sm:$0xff] }
 0x14a   :  { %v440_v6 = vadd.f32 %v437_v3, %v435_v55  ;;  %v394_v8 = vadd.f32 %v393_v2, %v392_v58  ;;  %v1583_v55 = vpack.c.bf16 %v1064_v54, %v1063_v53  ;;  %v1065_v58 = vld [vmem:[%s2279_s2 + $0xc0] sm:$0xff]  ;;  %v1068_v2 = vld [vmem:[%s2279_s2 + $0xd8] sm:$0xff]  ;;  %v1598_v51 = vpack.c.bf16 %v523_v46, %v522_v45  ;;  %v1082_v45 = vld [vmem:[%s2279_s2 + $0x148] sm:$0xff] }
 0x14b   :  { %v469_v7 = vsel %vm432_vm1, %v466_v56, %v468_v5  ;;  %v1069_v5 = vld [vmem:[%s2279_s2 + $0xe0] sm:$0xff] }
 0x14c   :  { %v472_v9 = vadd.f32 %v469_v7, %v467_v60  ;;  %v441_v10 = vrot.slane %v440_v6, 4  ;;  %1578 = vmatpush3.bf16.msra.mxu1 %v1577_v49  ;;  %v1066_v60 = vld [vmem:[%s2279_s2 + $0xc8] sm:$0xff] }
 0x14d   :  { %395 = vrot.lane.b32.xlu0 %v394_v8, %s1703_s1  ;;  %1579 = vmatprep.subr.bf16.mxu1 %v1700_v0  ;;  %v1586_v61 = vpack.c.bf16 %v1066_v60, %v1065_v58  ;;  %v528_v60 = vld [vmem:[%s2279_s2 + $0x30] sm:$0xff] }
 0x14e   :  { %v442_v11 = vadd.f32 %v441_v10, %v440_v6  ;;  %v473_v12 = vrot.slane %v472_v9, 4  ;;  %v1070_v6 = vld [vmem:[%s2279_s2 + $0xe8] sm:$0xff] }
 0x14f   :  { %v1592_v7 = vpack.c.bf16 %v1070_v6, %v1069_v5  ;;  %v530_v6 = vld [vmem:[%s2279_s2 + $0x40] sm:$0xff] }
 0x150   :  { %v443_v13 = vrot.slane %v442_v11, 2  ;;  %v474_v14 = vadd.f32 %v473_v12, %v472_v9  ;;  %1581 = vmatpush3.bf16.msra.mxu1 %v1580_v52  ;;  %v1072_v9 = vld [vmem:[%s2279_s2 + $0xf8] sm:$0xff] }
 0x151   :  { %1582 = vmatprep.subr.bf16.mxu1 %v1700_v0 }
 0x152   :  { %v444_v17 = vadd.f32 %v443_v13, %v442_v11  ;;  %v475_v18 = vrot.slane %v474_v14, 2 }
 0x154   :  { %v445_v19 = vrot.slane %v444_v17, 1  ;;  %v476_v20 = vadd.f32 %v475_v18, %v474_v14  ;;  %1584 = vmatpush3.bf16.msra.mxu1 %v1583_v55  ;;  %v526_v55 = vld [vmem:[%s2279_s2 + $0x20] sm:$0xff] }
 0x155   :  { %1585 = vmatprep.subr.bf16.mxu1 %v1700_v0 }
 0x156   :  { %v446_v21 = vadd.f32 %v445_v19, %v444_v17  ;;  %v477_v22 = vrot.slane %v476_v20, 1 }
 0x158   :  { %447 = vrot.lane.b32.xlu1 %v446_v21, %s1703_s1  ;;  %v478_v23 = vadd.f32 %v477_v22, %v476_v20  ;;  %1587 = vmatpush3.bf16.msra.mxu1 %v1586_v61  ;;  %v529_v61 = vld [vmem:[%s2279_s2 + $0x38] sm:$0xff] }
 0x159   :  { %1588 = vmatprep.subr.bf16.mxu1 %v1700_v0 }
 0x15c   :  { %479 = vrot.lane.b32.xlu1 %v478_v23, %s1703_s1 }
 0x1bb   :  { %v375_v24 = vpop.permute.xlu0 %374 }
 0x1bc   :  { %v376_v25 = vadd.f32 %v375_v24, %v373_v1  ;;  %v1067_v1 = vld [vmem:[%s2279_s2 + $0xd0] sm:$0xff]  ;;  %v411_v24 = vlaneseq }
 0x1bd   :  { %v1589_v3 = vpack.c.bf16 %v1068_v2, %v1067_v1 }
 0x1be   :  { %377 = vrot.lane.b32.xlu0 %v376_v25, %s1704_s8 }
 0x1bf   :  { %v396_v26 = vpop.permute.xlu0 %395  ;;  %1590 = vmatpush3.bf16.msra.mxu1 %v1589_v3 }
 0x1c0   :  { %v397_v27 = vadd.f32 %v396_v26, %v394_v8  ;;  %1591 = vmatprep.subr.bf16.mxu1 %v1700_v0  ;;  %v1071_v8 = vld [vmem:[%s2279_s2 + $0xf0] sm:$0xff] }
 0x1c1   :  { %v1595_v11 = vpack.c.bf16 %v1072_v9, %v1071_v8 }
 0x1c2   :  { %398 = vrot.lane.b32.xlu1 %v397_v27, %s1704_s8 }
 0x1c3   :  { %1593 = vmatpush3.bf16.msra.mxu1 %v1592_v7  ;;  %v531_v7 = vld [vmem:[%s2279_s2 + $0x48] sm:$0xff] }
 0x1c4   :  { %1594 = vmatprep.subr.bf16.mxu1 %v1700_v0 }
 0x1c7   :  { %1596 = vmatpush3.bf16.msra.mxu1 %v1595_v11 }
 0x1c8   :  { %1597 = vmatprep.subr.bf16.mxu1 %v1700_v0 }
 0x1ca   :  { %v448_v28 = vpop.permute.xlu1 %447 }
 0x1cb   :  { %v449_v29 = vadd.f32 %v448_v28, %v446_v21 }
 0x1cd   :  { %450 = vrot.lane.b32.xlu0 %v449_v29, %s1704_s8 }
 0x1ce   :  { %v480_v30 = vpop.permute.xlu1 %479 }
 0x1cf   :  { %v481_v32 = vadd.f32 %v480_v30, %v478_v23 }
 0x1d1   :  { %482 = vrot.lane.b32.xlu1 %v481_v32, %s1704_s8 }
 0x230   :  { %v378_v34 = vpop.permute.xlu0 %377 }
 0x231   :  { %v379_v35 = vadd.f32 %v378_v34, %v376_v25 }
 0x233   :  { %380 = vrot.lane.b32.xlu0 %v379_v35, %s1705_s9 }
 0x234   :  { %v399_v36 = vpop.permute.xlu1 %398 }
 0x235   :  { %v400_v37 = vadd.f32 %v399_v36, %v397_v27  ;;  %v412_v27 = vshrl.u32 %v411_v24, 7  ;;  %v1073_v24 = vld [vmem:[%s2279_s2 + $0x100] sm:$0xff] }
 0x237   :  { %401 = vrot.lane.b32.xlu1 %v400_v37, %s1705_s9 }
 0x23f   :  { %v451_v38 = vpop.permute.xlu0 %450 }
 0x240   :  { %v452_v39 = vadd.f32 %v451_v38, %v449_v29  ;;  %v2051_v29 = vsub.s32 0, %v412_v27 }
 0x242   :  { %453 = vrot.lane.b32.xlu0 %v452_v39, %s1705_s9 }
 0x243   :  { %v483_v41 = vpop.permute.xlu1 %482 }
 0x244   :  { %v484_v42 = vadd.f32 %v483_v41, %v481_v32 }
 0x246   :  { %485 = vrot.lane.b32.xlu1 %v484_v42, %s1705_s9 }
 0x2a5   :  { %v381_v56 = vpop.permute.xlu0 %380 }
 0x2a6   :  { %v382_v57 = vadd.f32 %v381_v56, %v379_v35  ;;  %v527_v56 = vld [vmem:[%s2279_s2 + $0x28] sm:$0xff] }
 0x2a7   :  { %v1604_v58 = vpack.c.bf16 %v527_v56, %v526_v55  ;;  %v1088_v55 = vld [vmem:[%s2279_s2 + $0x178] sm:$0xff] }
 0x2a8   :  { %383 = vrot.lane.b32.xlu0 %v382_v57, %s1706_s30 }
 0x2a9   :  { %v402_v62 = vpop.permute.xlu1 %401 }
 0x2aa   :  { %v403_v63 = vadd.f32 %v402_v62, %v400_v37 }
 0x2ac   :  { %404 = vrot.lane.b32.xlu1 %v403_v63, %s1706_s30 }
 0x2b4   :  { %v454_v10 = vpop.permute.xlu0 %453 }
 0x2b5   :  { %v455_v12 = vadd.f32 %v454_v10, %v452_v39 }
 0x2b7   :  { %456 = vrot.lane.b32.xlu0 %v455_v12, %s1706_s30 }
 0x2b8   :  { %v486_v13 = vpop.permute.xlu1 %485 }
 0x2b9   :  { %v487_v14 = vadd.f32 %v486_v13, %v484_v42  ;;  %v533_v13 = vld [vmem:[%s2279_s2 + $0x58] sm:$0xff] }
 0x2bb   :  { %488 = vrot.lane.b32.xlu1 %v487_v14, %s1706_s30 }
 0x31a   :  { %v384_v17 = vpop.permute.xlu0 %383 }
 0x31b   :  { %v385_v18 = vadd.f32 %v384_v17, %v382_v57  ;;  %v534_v17 = vld [vmem:[%s2279_s2 + $0x60] sm:$0xff] }
 0x31d   :  { %v407_v19 = vmul.f32 0.00390625, %v385_v18  ;;  %v535_v18 = vld [vmem:[%s2279_s2 + $0x68] sm:$0xff] }
 0x31e   :  { %v405_v20 = vpop.permute.xlu1 %404 }
 0x31f   :  { %v406_v21 = vadd.f32 %v405_v20, %v403_v63  ;;  %v409_v22 = vmul.f32 %v407_v19, %v407_v19  ;;  %v414_v35 = vrot.slane %v407_v19, %v2051_v29  ;;  %v1607_v63 = vpack.c.bf16 %v529_v61, %v528_v60 }
 0x320   :  { %v1616_v19 = vpack.c.bf16 %v535_v18, %v534_v17 }
 0x321   :  { %v408_v23 = vmul.f32 0.00390625, %v406_v21  ;;  %v415_v41 = vsub.f32 %v1950_v31, %v414_v35  ;;  %v416_v42 = vsub.f32 %v1952_v33, %v414_v35  ;;  %v524_v31 = vld [vmem:[%s2279_s2 + $0x10] sm:$0xff]  ;;  %v525_v33 = vld [vmem:[%s2279_s2 + $0x18] sm:$0xff]  ;;  %v1077_v35 = vld [vmem:[%s2279_s2 + $0x120] sm:$0xff] }
 0x322   :  { %v1601_v54 = vpack.c.bf16 %v525_v33, %v524_v31  ;;  %v536_v21 = vld [vmem:[%s2279_s2 + $0x70] sm:$0xff]  ;;  %v1086_v31 = vld [vmem:[%s2279_s2 + $0x168] sm:$0xff] }
 0x323   :  { %v410_v25 = vsub.f32 %v408_v23, %v409_v22  ;;  %v537_v22 = vld [vmem:[%s2279_s2 + $0x78] sm:$0xff] }
 0x324   :  { %v1619_v23 = vpack.c.bf16 %v537_v22, %v536_v21 }
 0x325   :  { %v417_v26 = vadd.f32 1e-05, %v410_v25  ;;  %v1074_v25 = vld [vmem:[%s2279_s2 + $0x108] sm:$0xff] }
 0x326   :  { %v1622_v27 = vpack.c.bf16 %v1074_v25, %v1073_v24 }
 0x327   :  { %1692 = vrsqrt.f32 %v417_v26 }
 0x329   :  { %v457_v28 = vpop.permute.xlu0 %456 }
 0x32a   :  { %v458_v30 = vadd.f32 %v457_v28, %v455_v12  ;;  %v532_v12 = vld [vmem:[%s2279_s2 + $0x50] sm:$0xff] }
 0x32b   :  { %v1075_v28 = vld [vmem:[%s2279_s2 + $0x110] sm:$0xff] }
 0x32c   :  { %v491_v32 = vmul.f32 0.00390625, %v458_v30  ;;  %v1076_v30 = vld [vmem:[%s2279_s2 + $0x118] sm:$0xff] }
 0x32d   :  { %v489_v34 = vpop.permute.xlu1 %488 }
 0x32e   :  { %v490_v36 = vadd.f32 %v489_v34, %v487_v14  ;;  %v493_v37 = vmul.f32 %v491_v32, %v491_v32  ;;  %v498_v57 = vrot.slane %v491_v32, %v2051_v29  ;;  %v1613_v14 = vpack.c.bf16 %v533_v13, %v532_v12 }
 0x32f   :  { %v1625_v34 = vpack.c.bf16 %v1076_v30, %v1075_v28 }
 0x330   :  { %v492_v38 = vmul.f32 0.00390625, %v490_v36  ;;  %v499_v1 = vsub.f32 %v1960_v40, %v498_v57  ;;  %v500_v2 = vsub.f32 %v1965_v48, %v498_v57  ;;  %v501_v3 = vsub.f32 %v1971_v59, %v498_v57  ;;  %v1078_v36 = vld [vmem:[%s2279_s2 + $0x128] sm:$0xff] }
 0x331   :  { %v1693_v39 = vpop.eup %1692  ;;  %v1610_v59 = vpack.c.bf16 %v531_v7, %v530_v6 }
 0x332   :  { %v422_v43 = vrot.slane %v1693_v39, %v2051_v29  ;;  %v494_v44 = vsub.f32 %v492_v38, %v493_v37  ;;  %v1628_v38 = vpack.c.bf16 %v1078_v36, %v1077_v35  ;;  %v1079_v39 = vld [vmem:[%s2279_s2 + $0x130] sm:$0xff] }
 0x334   :  { %v423_v47 = vmul.f32 %v422_v43, %v415_v41  ;;  %v424_v49 = vmul.f32 %v422_v43, %v416_v42  ;;  %v502_v50 = vadd.f32 1e-05, %v494_v44  ;;  %v1080_v41 = vld [vmem:[%s2279_s2 + $0x138] sm:$0xff]  ;;  %v1081_v44 = vld [vmem:[%s2279_s2 + $0x140] sm:$0xff] }
 0x335   :  { %v1631_v43 = vpack.c.bf16 %v1080_v41, %v1079_v39 }
 0x336   :  { %v425_v52 = vmax.f32 %v423_v47, 0.0  ;;  %v426_v53 = vmax.f32 %v424_v49, 0.0  ;;  %1694 = vrsqrt.f32 %v502_v50  ;;  %v1634_v47 = vpack.c.bf16 %v1082_v45, %v1081_v44  ;;  %v1083_v49 = vld [vmem:[%s2279_s2 + $0x150] sm:$0xff]  ;;  %v1084_v50 = vld [vmem:[%s2279_s2 + $0x158] sm:$0xff] }
 0x338   :  { %427 = vst [vmem:[#allocation2 + $0x1] sm:$0xff] %v425_v52  ;;  %428 = vst [vmem:[#allocation2 + $0x9] sm:$0xff] %v426_v53  ;;  %1393 = vmatmul.mubr.f32.vlgmr.msra.gmra.mrb[0].mxu1 %v425_v52  ;;  %v1637_v52 = vpack.c.bf16 %v1084_v50, %v1083_v49 }
 0x339   :  { %1599 = vmatpush3.bf16.msra.mxu1 %v1598_v51  ;;  %1395 = vmatprep.mubr.msk.f32.mxu1 %vm1701_vm0, %v1702_v4 }
 0x33a   :  { %1600 = vmatprep.subr.bf16.mxu1 %v1700_v0 }
 0x33c   :  { %1396 = vmatmul.mubr.f32.gmra.mrb[2].mxu1 %v426_v53  ;;  %v1085_v53 = vld [vmem:[%s2279_s2 + $0x160] sm:$0xff] }
 0x33d   :  { %1602 = vmatpush3.bf16.msra.mxu1 %v1601_v54  ;;  %1398 = vmatprep.mubr.msk.f32.mxu1 %vm1701_vm0, %v1702_v4  ;;  %v1640_v33 = vpack.c.bf16 %v1086_v31, %v1085_v53  ;;  %v1087_v54 = vld [vmem:[%s2279_s2 + $0x170] sm:$0xff] }
 0x33e   :  { %1603 = vmatprep.subr.bf16.mxu1 %v1700_v0  ;;  %v1643_v56 = vpack.c.bf16 %v1088_v55, %v1087_v54 }
 0x33f   :  { %v517_v32 = vld [vmem:[#allocation2] sm:$0xff]  ;;  %v518_v37 = vld [vmem:[#allocation2 + $0x8] sm:$0xff] }
 0x340   :  { %v1695_v62 = vpop.eup %1694  ;;  %v740_v57 = vld [vmem:[#allocation2 + $0x2] sm:$0xff] }
 0x341   :  { %v507_v5 = vrot.slane %v1695_v62, %v2051_v29  ;;  %1605 = vmatpush3.bf16.msra.mxu1 %v1604_v58  ;;  %v741_v58 = vld [vmem:[#allocation2 + $0xa] sm:$0xff] }
 0x342   :  { %1606 = vmatprep.subr.bf16.mxu1 %v1700_v0 }
 0x343   :  { %v508_v8 = vmul.f32 %v507_v5, %v499_v1  ;;  %v509_v9 = vmul.f32 %v507_v5, %v500_v2  ;;  %v510_v40 = vmul.f32 %v507_v5, %v501_v3 }
 0x345   :  { %v511_v10 = vmax.f32 %v508_v8, 0.0  ;;  %v512_v48 = vmax.f32 %v509_v9, 0.0  ;;  %v513_v11 = vmax.f32 %v510_v40, 0.0  ;;  %1608 = vmatpush3.bf16.msra.mxu1 %v1607_v63 }
 0x346   :  { %1609 = vmatprep.subr.bf16.mxu1 %v1700_v0 }
 0x347   :  { %514 = vst [vmem:[#allocation2 + $0x11] sm:$0xfc] %v511_v10  ;;  %515 = vst [vmem:[#allocation2 + $0x19] sm:$0xff] %v512_v48 }
 0x348   :  { %516 = vst [vmem:[#allocation2 + $0x21] sm:$0x3] %v513_v11 }
 0x349   :  { %1611 = vmatpush3.bf16.msra.mxu1 %v1610_v59 }
 0x34a   :  { %1612 = vmatprep.subr.bf16.mxu1 %v1700_v0 }
 0x34d   :  { %1614 = vmatpush3.bf16.msra.mxu1 %v1613_v14 }
 0x34e   :  { %v540_v20 = vld [vmem:[#allocation2 + $0x11] sm:$0xff]  ;;  %1615 = vmatprep.subr.bf16.mxu1 %v1700_v0 }
 0x34f   :  { %1399 = vmatmul.mubr.f32.gmra.mrb[4].mxu1 %v540_v20  ;;  %v542_v26 = vld [vmem:[#allocation2 + $0x21] sm:$0x3]  ;;  %v519_v42 = vld [vmem:[#allocation2 + $0x10] sm:$0xff]  ;;  %v520_v46 = vld [vmem:[#allocation2 + $0x18] sm:$0xff] }
 0x350   :  { %1401 = vmatprep.mubr.msk.f32.mxu1 %vm1701_vm0, %v1702_v4  ;;  %v521_v51 = vld [vmem:[#allocation2 + $0x20] sm:$0x3]  ;;  %v742_v60 = vld [vmem:[#allocation2 + $0x12] sm:$0xff] }
 0x351   :  { %1617 = vmatpush3.bf16.msra.mxu1 %v1616_v19  ;;  %v743_v61 = vld [vmem:[#allocation2 + $0x1a] sm:$0xff] }
 0x352   :  { %1618 = vmatprep.subr.bf16.mxu1 %v1700_v0 }
 0x353   :  { %1402 = vmatmul.mubr.f32.gmra.mrb[6].mxu1 %v512_v48 }
 0x354   :  { %1404 = vmatprep.mubr.msk.f32.mxu1 %vm1701_vm0, %v1702_v4 }
 0x355   :  { %1620 = vmatpush3.bf16.msra.mxu1 %v1619_v23 }
 0x356   :  { %1621 = vmatprep.subr.bf16.mxu1 %v1700_v0 }
 0x357   :  { %1405 = vmatmul.mubr.f32.gmra.mrb[8].mxu1 %v542_v26 }
 0x358   :  { %1439 = vmatprep.mubr.msk.f32.mxu1 %vm1701_vm0, %v1702_v4 }
 0x35b   :  { %1440 = vmatmul.mubr.f32.vlgmr.msra.gmra.mrb[0].mxu1 %v517_v32 }
 0x35c   :  { %1623 = vmatpush3.bf16.msra.mxu1 %v1622_v27  ;;  %1442 = vmatprep.mubr.msk.f32.mxu1 %vm1701_vm0, %v1702_v4 }
 0x35d   :  { %1624 = vmatprep.subr.bf16.mxu1 %v1700_v0 }
 0x35f   :  { %1443 = vmatmul.mubr.f32.gmra.mrb[2].mxu1 %v518_v37 }
 0x360   :  { %1626 = vmatpush3.bf16.msra.mxu1 %v1625_v34  ;;  %1445 = vmatprep.mubr.msk.f32.mxu1 %vm1701_vm0, %v1702_v4 }
 0x361   :  { %1627 = vmatprep.subr.bf16.mxu1 %v1700_v0 }
 0x363   :  { %1446 = vmatmul.mubr.f32.gmra.mrb[4].mxu1 %v519_v42 }
 0x364   :  { %1629 = vmatpush3.bf16.msra.mxu1 %v1628_v38  ;;  %1448 = vmatprep.mubr.msk.f32.mxu1 %vm1701_vm0, %v1702_v4 }
 0x365   :  { %1630 = vmatprep.subr.bf16.mxu1 %v1700_v0 }
 0x367   :  { %1449 = vmatmul.mubr.f32.gmra.mrb[6].mxu1 %v520_v46 }
 0x368   :  { %1632 = vmatpush3.bf16.msra.mxu1 %v1631_v43  ;;  %1451 = vmatprep.mubr.msk.f32.mxu1 %vm1701_vm0, %v1702_v4 }
 0x369   :  { %1633 = vmatprep.subr.bf16.mxu1 %v1700_v0 }
 0x36b   :  { %1452 = vmatmul.mubr.f32.gmra.mrb[8].mxu1 %v521_v51 }
 0x36c   :  { %1635 = vmatpush3.bf16.msra.mxu1 %v1634_v47  ;;  %1486 = vmatprep.mubr.msk.f32.mxu1 %vm1701_vm0, %v1702_v4 }
 0x36d   :  { %1636 = vmatprep.subr.bf16.mxu1 %v1700_v0 }
 0x370   :  { %1638 = vmatpush3.bf16.msra.mxu1 %v1637_v52 }
 0x371   :  { %1639 = vmatprep.subr.bf16.mxu1 %v1700_v0 }
 0x374   :  { %1641 = vmatpush3.bf16.msra.mxu1 %v1640_v33 }
 0x375   :  { %1642 = vmatprep.subr.bf16.mxu1 %v1700_v0  ;;  %v744_v0 = vld [vmem:[#allocation2 + $0x22] sm:$0x3] }
 0x378   :  { %1644 = vmatpush3.bf16.msra.mxu1 %v1643_v56 }
 0x37b   :  { %1487 = vmatmul.mubr.f32.vlgmr.msra.gmra.mrb[0].mxu1 %v740_v57 }
 0x37c   :  { %1489 = vmatprep.mubr.msk.f32.mxu1 %vm1701_vm0, %v1702_v4 }
 0x37f   :  { %1490 = vmatmul.mubr.f32.gmra.mrb[2].mxu1 %v741_v58 }
 0x380   :  { %1492 = vmatprep.mubr.msk.f32.mxu1 %vm1701_vm0, %v1702_v4 }
 0x383   :  { %1493 = vmatmul.mubr.f32.gmra.mrb[4].mxu1 %v742_v60 }
 0x384   :  { %1495 = vmatprep.mubr.msk.f32.mxu1 %vm1701_vm0, %v1702_v4 }
 0x387   :  { %1496 = vmatmul.mubr.f32.gmra.mrb[6].mxu1 %v743_v61 }
 0x388   :  { %1498 = vmatprep.mubr.msk.f32.mxu1 %vm1701_vm0, %v1702_v4 }
 0x38b   :  { %1499 = vmatmul.mubr.f32.gmra.mrb[8].mxu1 %v744_v0 }
 0x44e   :  { %v2201_v62 = vpop.f32.mrb[0].mxu1 }
 0x44f   :  { %v1488_v63 = vpop.f32.mrb[1].mxu1  ;;  %v878_v2 = vmul.f32 %v2201_v62, %v2201_v62 }
 0x452   :  { %v2203_v1 = vpop.f32.mrb[2].mxu1 }
 0x453   :  { %v859_v3 = vadd.f32 %v2203_v1, %v2201_v62  ;;  %v879_v5 = vmul.f32 %v2203_v1, %v2203_v1  ;;  %v1491_v6 = vpop.f32.mrb[3].mxu1 }
 0x455   :  { %v880_v7 = vadd.f32 %v879_v5, %v878_v2  ;;  %v860_v17 = vrot.slane %v859_v3, 4 }
 0x456   :  { %v2211_v8 = vpop.f32.mrb[4].mxu1 }
 0x457   :  { %v1494_v4 = vpop.f32.mrb[5].mxu1  ;;  %v952_v9 = vmul.f32 %v2211_v8, %v2211_v8  ;;  %v926_v10 = vrot.slane %v2211_v8, 2  ;;  %v881_v23 = vrot.slane %v880_v7, 4  ;;  %v861_v26 = vadd.f32 %v860_v17, %v859_v3 }
 0x459   :  { %v958_v12 = vrot.slane %v952_v9, 2  ;;  %v882_v30 = vadd.f32 %v881_v23, %v880_v7  ;;  %v862_v35 = vrot.slane %v861_v26, 2 }
 0x45a   :  { %v2215_v40 = vpop.f32.mrb[6].mxu1 }
 0x45b   :  { %v927_v48 = vrot.slane %v2215_v40, 2  ;;  %v953_v11 = vmul.f32 %v2215_v40, %v2215_v40  ;;  %v1497_v59 = vpop.f32.mrb[7].mxu1  ;;  %v883_v41 = vrot.slane %v882_v30, 2  ;;  %v863_v44 = vadd.f32 %v862_v35, %v861_v26 }
 0x45d   :  { %v928_v13 = vsel %vm432_vm1, %v926_v10, %v927_v48  ;;  %v959_v14 = vrot.slane %v953_v11, 2  ;;  %v884_v47 = vadd.f32 %v883_v41, %v882_v30  ;;  %v864_v51 = vrot.slane %v863_v44, 1 }
 0x45e   :  { %v2222_v18 = vpop.f32.mrb[8].mxu1 }
 0x45f   :  { %v960_v19 = vsel %vm432_vm1, %v958_v12, %v959_v14  ;;  %v929_v20 = vrot.slane %v2222_v18, 2  ;;  %v954_v21 = vmul.f32 %v2222_v18, %v2222_v18  ;;  %v1500_v22 = vpop.f32.mrb[9].mxu1  ;;  %v885_v53 = vrot.slane %v884_v47, 1 }
 0x460   :  { %v865_v31 = vadd.f32 %v864_v51, %v863_v44 }
 0x461   :  { %v930_v24 = vsel %vm432_vm1, %v927_v48, %v929_v20  ;;  %v961_v25 = vrot.slane %v954_v21, 2  ;;  %v886_v33 = vadd.f32 %v885_v53, %v884_v47 }
 0x462   :  { %v933_v27 = vadd.f32 %v930_v24, %v928_v13 }
 0x463   :  { %v962_v28 = vsel %vm432_vm1, %v959_v14, %v961_v25 }
 0x464   :  { %v965_v32 = vadd.f32 %v962_v28, %v960_v19  ;;  %v934_v34 = vrot.slane %v933_v27, 4 }
 0x466   :  { %v935_v36 = vadd.f32 %v934_v34, %v933_v27  ;;  %v966_v37 = vrot.slane %v965_v32, 4 }
 0x468   :  { %v936_v38 = vrot.slane %v935_v36, 2  ;;  %v967_v39 = vadd.f32 %v966_v37, %v965_v32 }
 0x46a   :  { %v937_v42 = vadd.f32 %v936_v38, %v935_v36  ;;  %v968_v43 = vrot.slane %v967_v39, 2 }
 0x46c   :  { %v938_v45 = vrot.slane %v937_v42, 1  ;;  %v969_v46 = vadd.f32 %v968_v43, %v967_v39 }
 0x46e   :  { %v939_v49 = vadd.f32 %v938_v45, %v937_v42  ;;  %v970_v50 = vrot.slane %v969_v46, 1 }
 0x470   :  { %940 = vrot.lane.b32.xlu0 %v939_v49, %s1703_s1  ;;  %v971_v52 = vadd.f32 %v970_v50, %v969_v46 }
 0x472   :  { %972 = vrot.lane.b32.xlu1 %v971_v52, %s1703_s1 }
 0x474   :  { %866 = vrot.lane.b32.xlu0 %v865_v31, %s1703_s1 }
 0x476   :  { %887 = vrot.lane.b32.xlu1 %v886_v33, %s1703_s1 }
 0x4e2   :  { %v941_v54 = vpop.permute.xlu0 %940 }
 0x4e3   :  { %v942_v55 = vadd.f32 %v941_v54, %v939_v49 }
 0x4e4   :  { %v973_v56 = vpop.permute.xlu1 %972 }
 0x4e5   :  { %v974_v57 = vadd.f32 %v973_v56, %v971_v52  ;;  %943 = vrot.lane.b32.xlu0 %v942_v55, %s1704_s8  ;;  %v857_v56 = vld [vmem:[%s2278_s0] sm:$0xff] }
 0x4e6   :  { %v867_v58 = vpop.permute.xlu0 %866 }
 0x4e7   :  { %v868_v60 = vadd.f32 %v867_v58, %v865_v31  ;;  %975 = vrot.lane.b32.xlu1 %v974_v57, %s1704_s8 }
 0x4e8   :  { %v888_v61 = vpop.permute.xlu1 %887 }
 0x4e9   :  { %v889_v0 = vadd.f32 %v888_v61, %v886_v33  ;;  %869 = vrot.lane.b32.xlu0 %v868_v60, %s1704_s8 }
 0x4eb   :  { %890 = vrot.lane.b32.xlu1 %v889_v0, %s1704_s8 }
 0x557   :  { %v944_v63 = vpop.permute.xlu0 %943 }
 0x558   :  { %v945_v2 = vadd.f32 %v944_v63, %v942_v55 }
 0x559   :  { %v976_v3 = vpop.permute.xlu1 %975 }
 0x55a   :  { %v977_v5 = vadd.f32 %v976_v3, %v974_v57  ;;  %946 = vrot.lane.b32.xlu0 %v945_v2, %s1705_s9  ;;  %v858_v57 = vld [vmem:[%s2278_s0 + $0x8] sm:$0xff] }
 0x55b   :  { %v870_v6 = vpop.permute.xlu0 %869 }
 0x55c   :  { %v871_v7 = vadd.f32 %v870_v6, %v868_v60  ;;  %978 = vrot.lane.b32.xlu1 %v977_v5, %s1705_s9 }
 0x55d   :  { %v891_v4 = vpop.permute.xlu1 %890 }
 0x55e   :  { %v892_v9 = vadd.f32 %v891_v4, %v889_v0  ;;  %872 = vrot.lane.b32.xlu0 %v871_v7, %s1705_s9 }
 0x560   :  { %893 = vrot.lane.b32.xlu1 %v892_v9, %s1705_s9 }
 0x5cc   :  { %v947_v10 = vpop.permute.xlu0 %946 }
 0x5cd   :  { %v948_v48 = vadd.f32 %v947_v10, %v945_v2 }
 0x5ce   :  { %v979_v11 = vpop.permute.xlu1 %978 }
 0x5cf   :  { %v980_v59 = vadd.f32 %v979_v11, %v977_v5  ;;  %949 = vrot.lane.b32.xlu0 %v948_v48, %s1706_s30 }
 0x5d0   :  { %v873_v12 = vpop.permute.xlu0 %872 }
 0x5d1   :  { %v874_v13 = vadd.f32 %v873_v12, %v871_v7  ;;  %981 = vrot.lane.b32.xlu1 %v980_v59, %s1706_s30 }
 0x5d2   :  { %v894_v14 = vpop.permute.xlu1 %893 }
 0x5d3   :  { %v895_v17 = vadd.f32 %v894_v14, %v892_v9  ;;  %875 = vrot.lane.b32.xlu0 %v874_v13, %s1706_s30 }
 0x5d5   :  { %896 = vrot.lane.b32.xlu1 %v895_v17, %s1706_s30 }
 0x641   :  { %v950_v19 = vpop.permute.xlu0 %949 }
 0x642   :  { %v951_v20 = vadd.f32 %v950_v19, %v948_v48 }
 0x643   :  { %v982_v21 = vpop.permute.xlu1 %981 }
 0x644   :  { %v984_v22 = vmul.f32 0.00390625, %v951_v20  ;;  %v983_v23 = vadd.f32 %v982_v21, %v980_v59 }
 0x645   :  { %v876_v24 = vpop.permute.xlu0 %875 }
 0x646   :  { %v986_v25 = vmul.f32 %v984_v22, %v984_v22  ;;  %v985_v26 = vmul.f32 0.00390625, %v983_v23  ;;  %v877_v27 = vadd.f32 %v876_v24, %v874_v13  ;;  %v991_v41 = vrot.slane %v984_v22, %v2051_v29 }
 0x647   :  { %v897_v28 = vpop.permute.xlu1 %896 }
 0x648   :  { %v987_v30 = vsub.f32 %v985_v26, %v986_v25  ;;  %v899_v32 = vmul.f32 0.00390625, %v877_v27  ;;  %v898_v34 = vadd.f32 %v897_v28, %v895_v17  ;;  %v992_v43 = vsub.f32 %v2211_v8, %v991_v41 }
 0x649   :  { %v993_v44 = vsub.f32 %v2215_v40, %v991_v41  ;;  %v994_v45 = vsub.f32 %v2222_v18, %v991_v41 }
 0x64a   :  { %v995_v35 = vadd.f32 1e-05, %v987_v30  ;;  %v901_v36 = vmul.f32 %v899_v32, %v899_v32  ;;  %v900_v37 = vmul.f32 0.00390625, %v898_v34  ;;  %v906_v47 = vrot.slane %v899_v32, %v2051_v29 }
 0x64c   :  { %1696 = vrsqrt.f32 %v995_v35  ;;  %v902_v38 = vsub.f32 %v900_v37, %v901_v36  ;;  %v907_v54 = vsub.f32 %v2201_v62, %v906_v47  ;;  %v908_v55 = vsub.f32 %v2203_v1, %v906_v47 }
 0x64e   :  { %v909_v39 = vadd.f32 1e-05, %v902_v38 }
 0x650   :  { %1698 = vrsqrt.f32 %v909_v39 }
 0x656   :  { %v1697_v42 = vpop.eup %1696 }
 0x657   :  { %v1000_v46 = vrot.slane %v1697_v42, %v2051_v29 }
 0x659   :  { %v1001_v49 = vmul.f32 %v1000_v46, %v992_v43  ;;  %v1002_v50 = vmul.f32 %v1000_v46, %v993_v44  ;;  %v1003_v51 = vmul.f32 %v1000_v46, %v994_v45 }
 0x65a   :  { %v1699_v52 = vpop.eup %1698 }
 0x65b   :  { %v1007_v53 = vrot.slane %v1001_v49, 2  ;;  %v1008_v31 = vrot.slane %v1002_v50, 2  ;;  %v1010_v33 = vrot.slane %v1003_v51, 2  ;;  %v914_v8 = vrot.slane %v1699_v52, %v2051_v29 }
 0x65d   :  { %v1009_v40 = vsel %vm432_vm1, %v1007_v53, %v1008_v31  ;;  %v1011_v18 = vsel %vm432_vm1, %v1008_v31, %v1010_v33  ;;  %v915_v60 = vmul.f32 %v914_v8, %v907_v54  ;;  %v916_v1 = vmul.f32 %v914_v8, %v908_v55 }
 0x65e   :  { %v1014_v58 = vadd.f32 %v1772_v15, %v1009_v40  ;;  %v1015_v62 = vadd.f32 %v1778_v16, %v1011_v18 }
 0x65f   :  { %v917_v61 = vadd.f32 %v915_v60, %v857_v56  ;;  %v918_v29 = vadd.f32 %v916_v1, %v858_v57 }
 0x660   :  { %1091 = vst [vmem:[%s2280_s3 + $0x10] sm:$0xff] %v1014_v58  ;;  %1092 = vst [vmem:[%s2280_s3 + $0x18] sm:$0xff] %v1015_v62 }
 0x661   :  { %919 = vst [vmem:[%s2280_s3] sm:$0xff] %v917_v61  ;;  %920 = vst [vmem:[%s2280_s3 + $0x8] sm:$0xff] %v918_v29 }

</bundles_post_ra>
